<compile_context>
chip_gen: v7x
topology: tpu7x:2x2x1
jax: 0.10.0
libtpu: 0.0.40
codegen_flags: <defaults>
</compile_context>

<pallas_src>
import numpy as np
import jax
import jax.numpy as jnp
from jax import lax
from jax.experimental import pallas as pl
from jax.experimental.pallas import tpu as pltpu


def _round_up(x, m):
    return ((x + m - 1) // m) * m


def _as_int(v):
    if isinstance(v, (tuple, list)):
        return int(v[0])
    return int(v)


# ----------------------------------------------------------------------------
# Faithful port of gain_sparse_tensor_mask (host numpy, runs once at setup).
# ----------------------------------------------------------------------------
def gain_sparse_tensor_mask(weights, sparse_ratio, mode: str = "soft"):
    weights = np.asarray(weights)
    col_vector = sorted(np.abs(weights.ravel()))
    # Clamp: the original round(len * (1 - r)) indexes out of range at r == 0.
    threshold_value_idx = min(round(len(col_vector) * (1 - sparse_ratio)),
                              len(col_vector) - 1)
    threshold_value = col_vector[threshold_value_idx]
    if mode == "soft":
        s_weights = np.sign(weights) * np.maximum(np.abs(weights) - threshold_value, 0)
        mask = np.where(s_weights == 0, 0, 1)
    else:
        s_weights = np.where(np.abs(weights) < threshold_value, 0, weights)
        mask = np.where(s_weights == 0, 0, 1)
    return s_weights.astype(np.float32), mask.astype(np.float32)


# ----------------------------------------------------------------------------
# Pallas kernel: per-image conv as kh*kw shifted-row tap matmuls (implicit GEMM).
# ----------------------------------------------------------------------------
def _make_conv_taps_kernel(kh, kw, w_pad, stride, m_rows):
    taps = [(i, j) for i in range(kh) for j in range(kw)]

    def kernel(x_ref, w_ref, o_ref):
        # x_ref: (L_pad, C_in)        one flattened, spatially padded image
        # w_ref: (kh*kw, C_in, tco)   folded weight taps (lane-dense C_out tile)
        # o_ref: (m_rows, tco)        over-computed H_out*W_pad output rows
        acc = None
        for t, (i, j) in enumerate(taps):
            d = i * w_pad + j                       # static per-tap row offset
            if stride == 1:
                lhs = x_ref[pl.ds(d, m_rows), :]
            else:
                lhs = x_ref[pl.ds(d, m_rows, stride), :]
            part = jnp.dot(lhs, w_ref[t], preferred_element_type=jnp.float32)
            acc = part if acc is None else acc + part
        o_ref[...] = acc.astype(o_ref.dtype)

    return kernel


def conv_taps_pallas(x_flat, w_taps, *, kh, kw, w_pad, stride, m_rows,
                     vmem_limit_bytes=32 * 1024 * 1024):
    n, l_pad, c_in = x_flat.shape
    kk, c_in_w, c_out_pad = w_taps.shape
    assert kk == kh * kw and c_in_w == c_in

    # C_out tiling: full when <= 256 (weight stays resident across the whole grid),
    # otherwise 256-wide tiles so out/acc VMEM does not scale with C_out (v7x 64 MiB).
    tco = c_out_pad if c_out_pad <= 256 else 256
    assert c_out_pad % tco == 0
    nc = c_out_pad // tco

    kernel = _make_conv_taps_kernel(kh, kw, w_pad, stride, m_rows)

    return pl.pallas_call(
        kernel,
        out_shape=jax.ShapeDtypeStruct((n, m_rows, c_out_pad), x_flat.dtype),
        grid_spec=pltpu.PrefetchScalarGridSpec(
            num_scalar_prefetch=0,
            grid=(n, nc),
            in_specs=[
                # Whole padded image resident per grid step; constant over the c axis
                # so consecutive c steps do not re-DMA it.
                pl.BlockSpec((None, l_pad, c_in), lambda b, c: (b, 0, 0)),
                # Folded weight taps; constant block index when nc == 1 -> one DMA total.
                pl.BlockSpec((kk, c_in, tco), lambda b, c: (0, 0, c)),
            ],
            out_specs=pl.BlockSpec((None, m_rows, tco), lambda b, c: (b, 0, c)),
        ),
        compiler_params=pltpu.CompilerParams(
            dimension_semantics=("parallel", "parallel"),
            vmem_limit_bytes=vmem_limit_bytes,
        ),
    )(x_flat, w_taps)


# ----------------------------------------------------------------------------
# Wrapper: weight fold + NHWC/pad/flatten prep + fused epilogue back to NCHW.
# ----------------------------------------------------------------------------
def tucker_core_conv_forward(x, core_weight, s_weights, s_mask, stride=1, padding=0,
                             *, compute_dtype=jnp.bfloat16):
    """Matches Tucker_core_conv_layer.forward for NCHW x, OIHW weights."""
    s = _as_int(stride)
    p = _as_int(padding)
    c_out, c_in, kh, kw = core_weight.shape
    n, _, h, w = x.shape
    h_pad, w_pad = h + 2 * p, w + 2 * p
    h_out = (h_pad - kh) // s + 1
    w_out = (w_pad - kw) // s + 1

    # Fold the two convolutions: conv(x, Wc) + conv(x, Ws*mask) == conv(x, Wc + Ws*mask).
    w_folded = core_weight + s_weights * s_mask                        # (C_out, C_in, kh, kw)

    # Lane-dense C_out: 128 floor; 256-aligned once C_out > 128 (v6e/v7x 2x256^2 MXUs).
    c_out_pad = _round_up(c_out, 128) if c_out <= 128 else _round_up(c_out, 256)
    w_taps = jnp.transpose(w_folded, (2, 3, 1, 0)).reshape(kh * kw, c_in, c_out)
    w_taps = jnp.pad(w_taps, ((0, 0), (0, 0), (0, c_out_pad - c_out))).astype(compute_dtype)

    # Raw image -> NHWC, zero spatial pad, flatten (H_pad*W_pad) rows, pad the tail
    # rows needed by the last tap's shift. Under jit this is one fused copy pass.
    m_ov = h_out * w_pad                 # over-compute W_pad columns per output row
    m_rows = _round_up(m_ov, 8)
    d_max = (kh - 1) * w_pad + (kw - 1)
    l_valid = h_pad * w_pad
    l_pad = _round_up(max(l_valid, (m_rows - 1) * s + d_max + 1), 8)
    x_nhwc = jnp.transpose(x, (0, 2, 3, 1)).astype(compute_dtype)
    x_flat = jnp.pad(x_nhwc, ((0, 0), (p, p), (p, p), (0, 0))).reshape(n, l_valid, c_in)
    x_flat = jnp.pad(x_flat, ((0, 0), (0, l_pad - l_valid), (0, 0)))

    out_flat = conv_taps_pallas(x_flat, w_taps, kh=kh, kw=kw, w_pad=w_pad,
                                stride=s, m_rows=m_rows)

    # Epilogue: drop over-computed columns / padded channels, back to NCHW, f32.
    # One fused slice+reshape+transpose(+cast) pass in XLA.
    out = out_flat[:, :m_ov, :c_out].reshape(n, h_out, w_pad, c_out)
    out = out[:, :, :w_out, :].transpose(0, 3, 1, 2).astype(jnp.float32)
    return out


# ----------------------------------------------------------------------------
# Pure-JAX reference (lax.conv) for correctness checks.
# ----------------------------------------------------------------------------
def reference_forward(x, core_weight, s_weights, s_mask, stride, padding):
    dn = lax.conv_dimension_numbers(x.shape, core_weight.shape, ("NCHW", "OIHW", "NCHW"))
    conv = lambda wgt: lax.conv_general_dilated(
        x, wgt, window_strides=(stride, stride),
        padding=[(padding, padding), (padding, padding)],
        dimension_numbers=dn)
    return conv(core_weight) + conv(s_weights * s_mask)


# ----------------------------------------------------------------------------
if __name__ == "__main__":
    # Module configuration (synthetic, deterministic).
    N, C_in, H, W = 2, 4, 16, 16          # input x: NCHW
    C_out, kh, kw = 8, 3, 3               # tucker_core shape (C_out, C_in, kh, kw)
    stride, padding = 1, 1
    sparse_ratio = 0.5

    key = jax.random.PRNGKey(0)
    kx, kw_core = jax.random.split(key)
    x = jax.random.normal(kx, (N, C_in, H, W), dtype=jnp.float32)
    tucker_core = jax.random.normal(kw_core, (C_out, C_in, kh, kw), dtype=jnp.float32) * 0.1

    # __init__ logic: core_layer.weight = tucker_core; sparse weights derived from it.
    core_weight_np = np.asarray(tucker_core, dtype=np.float32)
    s_weights_np, s_mask_np = gain_sparse_tensor_mask(core_weight_np, sparse_ratio, mode="soft")

    core_weight = jnp.asarray(core_weight_np)
    s_weights = jnp.asarray(s_weights_np)
    s_mask = jnp.asarray(s_mask_np)

    ref = reference_forward(x, core_weight, s_weights, s_mask, stride, padding)
    ref = np.asarray(jax.block_until_ready(ref))

    fwd = jax.jit(tucker_core_conv_forward,
                  static_argnames=("stride", "padding", "compute_dtype"))

    # Exact-semantics check: same fused kernel path with fp32 operands.
    out_f32 = fwd(x, core_weight, s_weights, s_mask,
                  stride=stride, padding=padding, compute_dtype=jnp.float32)
    out_f32 = np.asarray(jax.block_until_ready(out_f32))
    np.testing.assert_allclose(out_f32, ref, rtol=1e-4, atol=1e-4)

    # Fast path: bf16 operands + bf16 writeback, fp32 MXU accumulation.
    out_bf16 = fwd(x, core_weight, s_weights, s_mask,
                   stride=stride, padding=padding, compute_dtype=jnp.bfloat16)
    out_bf16 = np.asarray(jax.block_until_ready(out_bf16))
    np.testing.assert_allclose(out_bf16, ref, rtol=5e-2, atol=5e-2)

    print("KERNEL_OK")
</pallas_src>

<mosaic_0001>
module attributes {stable_mosaic.version = 11 : i64} {
  func.func @kernel(%arg0: i32, %arg1: i32, %arg2: memref<1x328x4xf32, #tpu.memory_space<vmem>>, %arg3: memref<9x4x128xf32, #tpu.memory_space<vmem>>, %arg4: memref<1x288x128xf32, #tpu.memory_space<vmem>>) attributes {dimension_semantics = [#tpu.dimension_semantics<parallel>, #tpu.dimension_semantics<parallel>], iteration_bounds = array<i64: 2, 1>, scalar_prefetch = 0 : i64, scratch_operands = 0 : i64, tpu.core_type = #tpu.core_type<tc>, window_params = [{transform_indices = @transform_0, window_bounds = array<i64: 1, 328, 4>}, {transform_indices = @transform_1, window_bounds = array<i64: 9, 4, 128>}, {transform_indices = @transform_2, window_bounds = array<i64: 1, 288, 128>}]} {
    %c0 = arith.constant 0 : index
    %c0_0 = arith.constant 0 : index
    %c0_1 = arith.constant 0 : index
    %0 = vector.load %arg2[%c0, %c0_0, %c0_1] : memref<1x328x4xf32, #tpu.memory_space<vmem>>, vector<1x288x4xf32>
    %1 = vector.shape_cast %0 : vector<1x288x4xf32> to vector<288x4xf32>
    %c0_2 = arith.constant 0 : index
    %c0_3 = arith.constant 0 : index
    %c0_4 = arith.constant 0 : index
    %2 = vector.load %arg3[%c0_2, %c0_3, %c0_4] : memref<9x4x128xf32, #tpu.memory_space<vmem>>, vector<1x4x128xf32>
    %3 = vector.shape_cast %2 : vector<1x4x128xf32> to vector<4x128xf32>
    %cst = arith.constant dense<0.000000e+00> : vector<288x128xf32>
    %4 = tpu.matmul %1, %3, %cst {dimension_numbers = #tpu.dot_dimension_numbers<[1], [0], [0], [1], [0, 0, 1, 1], [], []>} : vector<288x4xf32>, vector<4x128xf32>, vector<288x128xf32> -> vector<288x128xf32>
    %c0_5 = arith.constant 0 : index
    %c1 = arith.constant 1 : index
    %c0_6 = arith.constant 0 : index
    %5 = vector.load %arg2[%c0_5, %c1, %c0_6] : memref<1x328x4xf32, #tpu.memory_space<vmem>>, vector<1x288x4xf32>
    %6 = vector.shape_cast %5 : vector<1x288x4xf32> to vector<288x4xf32>
    %c1_7 = arith.constant 1 : index
    %c0_8 = arith.constant 0 : index
    %c0_9 = arith.constant 0 : index
    %7 = vector.load %arg3[%c1_7, %c0_8, %c0_9] : memref<9x4x128xf32, #tpu.memory_space<vmem>>, vector<1x4x128xf32>
    %8 = vector.shape_cast %7 : vector<1x4x128xf32> to vector<4x128xf32>
    %cst_10 = arith.constant dense<0.000000e+00> : vector<288x128xf32>
    %9 = tpu.matmul %6, %8, %cst_10 {dimension_numbers = #tpu.dot_dimension_numbers<[1], [0], [0], [1], [0, 0, 1, 1], [], []>} : vector<288x4xf32>, vector<4x128xf32>, vector<288x128xf32> -> vector<288x128xf32>
    %10 = arith.addf %4, %9 : vector<288x128xf32>
    %c0_11 = arith.constant 0 : index
    %c2 = arith.constant 2 : index
    %c0_12 = arith.constant 0 : index
    %11 = vector.load %arg2[%c0_11, %c2, %c0_12] : memref<1x328x4xf32, #tpu.memory_space<vmem>>, vector<1x288x4xf32>
    %12 = vector.shape_cast %11 : vector<1x288x4xf32> to vector<288x4xf32>
    %c2_13 = arith.constant 2 : index
    %c0_14 = arith.constant 0 : index
    %c0_15 = arith.constant 0 : index
    %13 = vector.load %arg3[%c2_13, %c0_14, %c0_15] : memref<9x4x128xf32, #tpu.memory_space<vmem>>, vector<1x4x128xf32>
    %14 = vector.shape_cast %13 : vector<1x4x128xf32> to vector<4x128xf32>
    %cst_16 = arith.constant dense<0.000000e+00> : vector<288x128xf32>
    %15 = tpu.matmul %12, %14, %cst_16 {dimension_numbers = #tpu.dot_dimension_numbers<[1], [0], [0], [1], [0, 0, 1, 1], [], []>} : vector<288x4xf32>, vector<4x128xf32>, vector<288x128xf32> -> vector<288x128xf32>
    %16 = arith.addf %10, %15 : vector<288x128xf32>
    %c0_17 = arith.constant 0 : index
    %c18 = arith.constant 18 : index
    %c0_18 = arith.constant 0 : index
    %17 = vector.load %arg2[%c0_17, %c18, %c0_18] : memref<1x328x4xf32, #tpu.memory_space<vmem>>, vector<1x288x4xf32>
    %18 = vector.shape_cast %17 : vector<1x288x4xf32> to vector<288x4xf32>
    %c3 = arith.constant 3 : index
    %c0_19 = arith.constant 0 : index
    %c0_20 = arith.constant 0 : index
    %19 = vector.load %arg3[%c3, %c0_19, %c0_20] : memref<9x4x128xf32, #tpu.memory_space<vmem>>, vector<1x4x128xf32>
    %20 = vector.shape_cast %19 : vector<1x4x128xf32> to vector<4x128xf32>
    %cst_21 = arith.constant dense<0.000000e+00> : vector<288x128xf32>
    %21 = tpu.matmul %18, %20, %cst_21 {dimension_numbers = #tpu.dot_dimension_numbers<[1], [0], [0], [1], [0, 0, 1, 1], [], []>} : vector<288x4xf32>, vector<4x128xf32>, vector<288x128xf32> -> vector<288x128xf32>
    %22 = arith.addf %16, %21 : vector<288x128xf32>
    %c0_22 = arith.constant 0 : index
    %c19 = arith.constant 19 : index
    %c0_23 = arith.constant 0 : index
    %23 = vector.load %arg2[%c0_22, %c19, %c0_23] : memref<1x328x4xf32, #tpu.memory_space<vmem>>, vector<1x288x4xf32>
    %24 = vector.shape_cast %23 : vector<1x288x4xf32> to vector<288x4xf32>
    %c4 = arith.constant 4 : index
    %c0_24 = arith.constant 0 : index
    %c0_25 = arith.constant 0 : index
    %25 = vector.load %arg3[%c4, %c0_24, %c0_25] : memref<9x4x128xf32, #tpu.memory_space<vmem>>, vector<1x4x128xf32>
    %26 = vector.shape_cast %25 : vector<1x4x128xf32> to vector<4x128xf32>
    %cst_26 = arith.constant dense<0.000000e+00> : vector<288x128xf32>
    %27 = tpu.matmul %24, %26, %cst_26 {dimension_numbers = #tpu.dot_dimension_numbers<[1], [0], [0], [1], [0, 0, 1, 1], [], []>} : vector<288x4xf32>, vector<4x128xf32>, vector<288x128xf32> -> vector<288x128xf32>
    %28 = arith.addf %22, %27 : vector<288x128xf32>
    %c0_27 = arith.constant 0 : index
    %c20 = arith.constant 20 : index
    %c0_28 = arith.constant 0 : index
    %29 = vector.load %arg2[%c0_27, %c20, %c0_28] : memref<1x328x4xf32, #tpu.memory_space<vmem>>, vector<1x288x4xf32>
    %30 = vector.shape_cast %29 : vector<1x288x4xf32> to vector<288x4xf32>
    %c5 = arith.constant 5 : index
    %c0_29 = arith.constant 0 : index
    %c0_30 = arith.constant 0 : index
    %31 = vector.load %arg3[%c5, %c0_29, %c0_30] : memref<9x4x128xf32, #tpu.memory_space<vmem>>, vector<1x4x128xf32>
    %32 = vector.shape_cast %31 : vector<1x4x128xf32> to vector<4x128xf32>
    %cst_31 = arith.constant dense<0.000000e+00> : vector<288x128xf32>
    %33 = tpu.matmul %30, %32, %cst_31 {dimension_numbers = #tpu.dot_dimension_numbers<[1], [0], [0], [1], [0, 0, 1, 1], [], []>} : vector<288x4xf32>, vector<4x128xf32>, vector<288x128xf32> -> vector<288x128xf32>
    %34 = arith.addf %28, %33 : vector<288x128xf32>
    %c0_32 = arith.constant 0 : index
    %c36 = arith.constant 36 : index
    %c0_33 = arith.constant 0 : index
    %35 = vector.load %arg2[%c0_32, %c36, %c0_33] : memref<1x328x4xf32, #tpu.memory_space<vmem>>, vector<1x288x4xf32>
    %36 = vector.shape_cast %35 : vector<1x288x4xf32> to vector<288x4xf32>
    %c6 = arith.constant 6 : index
    %c0_34 = arith.constant 0 : index
    %c0_35 = arith.constant 0 : index
    %37 = vector.load %arg3[%c6, %c0_34, %c0_35] : memref<9x4x128xf32, #tpu.memory_space<vmem>>, vector<1x4x128xf32>
    %38 = vector.shape_cast %37 : vector<1x4x128xf32> to vector<4x128xf32>
    %cst_36 = arith.constant dense<0.000000e+00> : vector<288x128xf32>
    %39 = tpu.matmul %36, %38, %cst_36 {dimension_numbers = #tpu.dot_dimension_numbers<[1], [0], [0], [1], [0, 0, 1, 1], [], []>} : vector<288x4xf32>, vector<4x128xf32>, vector<288x128xf32> -> vector<288x128xf32>
    %40 = arith.addf %34, %39 : vector<288x128xf32>
    %c0_37 = arith.constant 0 : index
    %c37 = arith.constant 37 : index
    %c0_38 = arith.constant 0 : index
    %41 = vector.load %arg2[%c0_37, %c37, %c0_38] : memref<1x328x4xf32, #tpu.memory_space<vmem>>, vector<1x288x4xf32>
    %42 = vector.shape_cast %41 : vector<1x288x4xf32> to vector<288x4xf32>
    %c7 = arith.constant 7 : index
    %c0_39 = arith.constant 0 : index
    %c0_40 = arith.constant 0 : index
    %43 = vector.load %arg3[%c7, %c0_39, %c0_40] : memref<9x4x128xf32, #tpu.memory_space<vmem>>, vector<1x4x128xf32>
    %44 = vector.shape_cast %43 : vector<1x4x128xf32> to vector<4x128xf32>
    %cst_41 = arith.constant dense<0.000000e+00> : vector<288x128xf32>
    %45 = tpu.matmul %42, %44, %cst_41 {dimension_numbers = #tpu.dot_dimension_numbers<[1], [0], [0], [1], [0, 0, 1, 1], [], []>} : vector<288x4xf32>, vector<4x128xf32>, vector<288x128xf32> -> vector<288x128xf32>
    %46 = arith.addf %40, %45 : vector<288x128xf32>
    %c0_42 = arith.constant 0 : index
    %c38 = arith.constant 38 : index
    %c0_43 = arith.constant 0 : index
    %47 = vector.load %arg2[%c0_42, %c38, %c0_43] : memref<1x328x4xf32, #tpu.memory_space<vmem>>, vector<1x288x4xf32>
    %48 = vector.shape_cast %47 : vector<1x288x4xf32> to vector<288x4xf32>
    %c8 = arith.constant 8 : index
    %c0_44 = arith.constant 0 : index
    %c0_45 = arith.constant 0 : index
    %49 = vector.load %arg3[%c8, %c0_44, %c0_45] : memref<9x4x128xf32, #tpu.memory_space<vmem>>, vector<1x4x128xf32>
    %50 = vector.shape_cast %49 : vector<1x4x128xf32> to vector<4x128xf32>
    %cst_46 = arith.constant dense<0.000000e+00> : vector<288x128xf32>
    %51 = tpu.matmul %48, %50, %cst_46 {dimension_numbers = #tpu.dot_dimension_numbers<[1], [0], [0], [1], [0, 0, 1, 1], [], []>} : vector<288x4xf32>, vector<4x128xf32>, vector<288x128xf32> -> vector<288x128xf32>
    %52 = arith.addf %46, %51 : vector<288x128xf32>
    %c0_47 = arith.constant 0 : index
    %c0_48 = arith.constant 0 : index
    %c0_49 = arith.constant 0 : index
    %53 = vector.load %arg4[%c0_47, %c0_48, %c0_49] : memref<1x288x128xf32, #tpu.memory_space<vmem>>, vector<1x288x128xf32>
    %54 = vector.shape_cast %53 : vector<1x288x128xf32> to vector<288x128xf32>
    %55 = vector.shape_cast %52 : vector<288x128xf32> to vector<1x288x128xf32>
    tpu.vector_store %arg4[%c0_47, %c0_48, %c0_49], %55 {strides = array<i32>} : memref<1x288x128xf32, #tpu.memory_space<vmem>>, vector<1x288x128xf32>,
    return
  }
  func.func @transform_0(%arg0: i32, %arg1: i32) -> (i32, i32, i32) {
    %c0_i32 = arith.constant 0 : i32
    %c0_i32_0 = arith.constant 0 : i32
    %c0_i32_1 = arith.constant 0 : i32
    return %arg0, %c0_i32, %c0_i32_0 : i32, i32, i32
  }
  func.func @transform_1(%arg0: i32, %arg1: i32) -> (i32, i32, i32) {
    %c0_i32 = arith.constant 0 : i32
    %c0_i32_0 = arith.constant 0 : i32
    %c0_i32_1 = arith.constant 0 : i32
    return %c0_i32, %c0_i32_0, %arg1 : i32, i32, i32
  }
  func.func @transform_2(%arg0: i32, %arg1: i32) -> (i32, i32, i32) {
    %c0_i32 = arith.constant 0 : i32
    %c0_i32_0 = arith.constant 0 : i32
    return %arg0, %c0_i32, %arg1 : i32, i32, i32
  }
}

</mosaic_0001>

<bundles_post_ra>
// kernel: tucker_core_conv_forward.1
= control target key start
LH: loop header
LB: loop body
LE: loop exit
PB: predicated region body
PF: predicated region fallthrough
CT: control target
= control target key end

     0   :  { %s5652_s9 = smov 0   ;;  %s5654_s10 = smov 0   ;;  %s6654_s0 = inlined_call_operand.vmem [shape: f32[2,328,4], index: 0, kind: input, shape index: {}]   ;;  %s6655_s1 = inlined_call_operand.vmem [shape: f32[9,4,128], index: 1, kind: input, shape index: {}]   ;;  %s6656_s2 = inlined_call_operand.vmem [shape: f32[2,288,128], index: 2, kind: output, shape index: {}]  }
   0x1   :  { %s5656_s11 = smov 0  }
   0x2 LB: > { %s24_s12 = sadd.s32 1, %s5631_s10  ;;  %p4114_p0 = scmp.ge.s32.totalorder %s5635_s11, 1  ;;  %s5635_s11 = sphi %s5656_s11, %s12_s11   ;;  %s5631_s10 = sphi %s5654_s10, %s6658_s10   ;;  %s5627_s9 = sphi %s5652_s9, %s6657_s9  }
   0x3   : > { %p26_p1 = scmp.ge.s32.totalorder %s24_s12, 2  ;;  %p135_p2 = scmp.lt.s32.totalorder %s5635_s11, 3 }
   0x5   : > { %s6660_s12 = smov (%p26_p1, %s24_s12), 0  ;;  %p136_p3 = pnand %p4114_p0, %p135_p2 }
   0x6   : > { %v4117_v0 = vld [vmem:[%s6655_s1 + $0x4] sm:$0xf] (!%p136_p3)  ;;  %vm365_vm0 = vcmask (!%p136_p3), 1043456   ;;  %v5676_v1 = vld [vmem:[%s6655_s1 + $0x10] sm:$0xf] (!%p136_p3)  ;;  %p164_p4 = scmp.lt.s32.totalorder (!%p136_p3), %s5627_s9, 1 }
   0x7   : > { %139 = sbr.rel (%p136_p3) target bundleno = 556 (0x22c), region = 28  ;;  %4793 = vmatprep.subr.msk.mxu1 (!%p136_p3), %vm365_vm0, %v4117_v0  ;;  %5017 = vmatprep.subr.msk.mxu0 (!%p136_p3), %vm365_vm0, %v5676_v1  ;;  %v217_v2 = vld [vmem:[%s6655_s1] sm:$0xf] (!%p136_p3)  ;;  %v4306_v3 = vld [vmem:[%s6655_s1 + $0x14] sm:$0xf] (!%p136_p3)  ;;  %vm256_vm1 = vcmask (!%p136_p3), 31744  }
   0x8   : > { %4794 = vmatpush3.msk.msra.mxu1 (!%p136_p3), %vm365_vm0, %v4117_v0  ;;  %5018 = vmatpush3.msk.msra.mxu0 (!%p136_p3), %vm365_vm0, %v5676_v1  ;;  %v5713_v10 = vld [vmem:[%s6655_s1 + $0x18] sm:$0xf] (!%p136_p3)  ;;  %v5718_v11 = vld [vmem:[%s6655_s1 + $0x8] sm:$0xf] (!%p136_p3)  ;;  %v5801_v48 = vld [vmem:[%s6655_s1 + $0x1c] sm:$0xf] (!%p136_p3) }
   0x9   : > { %4849 = vmatprep.subr.msk.mxu1 (!%p136_p3), %vm365_vm0, %v217_v2  ;;  %5073 = vmatprep.subr.msk.mxu0 (!%p136_p3), %vm365_vm0, %v4306_v3 }
   0xe   : > { %s6662_s9 = smov (!%p164_p4, %s5627_s9), 1 }
   0xf   : > { %s5587_s21 = smul.u32 328, %s6662_s9 }
  0x10   : > { %s5588_s7 = smul.u32 288, %s6662_s9 }
  0x11   : > { %s5698_s24 = scalar_lea.vmem %s6654_s0, %s5587_s21 }
  0x12   : > { %v218_v4 = vld [vmem:[%s5698_s24 + $0x1] sm:$0xff]  ;;  %v1830_v5 = vld [vmem:[%s5698_s24 + $0x13] sm:$0xff]  ;;  %v219_v6 = vld [vmem:[%s5698_s24 + $0x9] sm:$0xff]  ;;  %s6607_s14 = scalar_lea.vmem %s6656_s2, %s5588_s7 }
  0x13   : > { %4795 = vmatprep.mubr.msk.f32.mxu1 %vm256_vm1, %v218_v4  ;;  %5019 = vmatprep.mubr.msk.f32.mxu0 %vm256_vm1, %v1830_v5  ;;  %v1831_v7 = vld [vmem:[%s5698_s24 + $0x1b] sm:$0xff]  ;;  %v220_v8 = vld [vmem:[%s5698_s24 + $0x11] sm:$0xff]  ;;  %v1832_v9 = vld [vmem:[%s5698_s24 + $0x23] sm:$0xff] }
  0x14   : > { %4796 = vmatmul.mubr.msk.f32.vlgmr.msra.gmra.mrb[0].mxu1 %vm256_vm1, %v219_v6  ;;  %5020 = vmatmul.mubr.msk.f32.vlgmr.msra.gmra.mrb[0].mxu0 %vm256_vm1, %v1831_v7  ;;  %v221_v12 = vld [vmem:[%s5698_s24 + $0x19] sm:$0xff]  ;;  %v1833_v13 = vld [vmem:[%s5698_s24 + $0x2b] sm:$0xff]  ;;  %v222_v14 = vld [vmem:[%s5698_s24 + $0x21] sm:$0xff] }
  0x15   : > { %4850 = vmatpush3.msk.msra.mxu1 %vm365_vm0, %v217_v2  ;;  %5074 = vmatpush3.msk.msra.mxu0 %vm365_vm0, %v4306_v3  ;;  %v1834_v15 = vld [vmem:[%s5698_s24 + $0x33] sm:$0xff]  ;;  %v223_v16 = vld [vmem:[%s5698_s24 + $0x29] sm:$0xff]  ;;  %v1835_v17 = vld [vmem:[%s5698_s24 + $0x3b] sm:$0xff] }
  0x16   : > { %4798 = vmatprep.mubr.msk.f32.mxu1 %vm256_vm1, %v220_v8  ;;  %5022 = vmatprep.mubr.msk.f32.mxu0 %vm256_vm1, %v1832_v9  ;;  %v224_v18 = vld [vmem:[%s5698_s24 + $0x31] sm:$0xff]  ;;  %v1836_v19 = vld [vmem:[%s5698_s24 + $0x43] sm:$0xff]  ;;  %v225_v20 = vld [vmem:[%s5698_s24 + $0x39] sm:$0xff] }
  0x17   : > { %5129 = vmatprep.subr.msk.mxu0 %vm365_vm0, %v5713_v10  ;;  %4905 = vmatprep.subr.msk.mxu1 %vm365_vm0, %v5718_v11  ;;  %v1837_v21 = vld [vmem:[%s5698_s24 + $0x4b] sm:$0xff]  ;;  %v226_v22 = vld [vmem:[%s5698_s24 + $0x41] sm:$0xff]  ;;  %v1838_v23 = vld [vmem:[%s5698_s24 + $0x53] sm:$0xff] }
  0x18   : > { %4799 = vmatmul.mubr.msk.f32.gmra.mrb[2].mxu1 %vm256_vm1, %v221_v12  ;;  %5023 = vmatmul.mubr.msk.f32.gmra.mrb[2].mxu0 %vm256_vm1, %v1833_v13  ;;  %v227_v24 = vld [vmem:[%s5698_s24 + $0x49] sm:$0xff]  ;;  %v1839_v25 = vld [vmem:[%s5698_s24 + $0x5b] sm:$0xff]  ;;  %v228_v26 = vld [vmem:[%s5698_s24 + $0x51] sm:$0xff] }
  0x19   : > { %4801 = vmatprep.mubr.msk.f32.mxu1 %vm256_vm1, %v222_v14  ;;  %5025 = vmatprep.mubr.msk.f32.mxu0 %vm256_vm1, %v1834_v15  ;;  %v1840_v27 = vld [vmem:[%s5698_s24 + $0x63] sm:$0xff]  ;;  %v229_v28 = vld [vmem:[%s5698_s24 + $0x59] sm:$0xff]  ;;  %v1841_v29 = vld [vmem:[%s5698_s24 + $0x6b] sm:$0xff] }
  0x1a   : > { %v230_v30 = vld [vmem:[%s5698_s24 + $0x61] sm:$0xff]  ;;  %v1842_v31 = vld [vmem:[%s5698_s24 + $0x73] sm:$0xff]  ;;  %v231_v32 = vld [vmem:[%s5698_s24 + $0x69] sm:$0xff] }
  0x1b   : > { %v1843_v33 = vld [vmem:[%s5698_s24 + $0x7b] sm:$0xff]  ;;  %v232_v34 = vld [vmem:[%s5698_s24 + $0x71] sm:$0xff]  ;;  %v1844_v35 = vld [vmem:[%s5698_s24 + $0x83] sm:$0xff] }
  0x1c   : > { %4802 = vmatmul.mubr.msk.f32.gmra.mrb[4].mxu1 %vm256_vm1, %v223_v16  ;;  %5026 = vmatmul.mubr.msk.f32.gmra.mrb[4].mxu0 %vm256_vm1, %v1835_v17  ;;  %v233_v36 = vld [vmem:[%s5698_s24 + $0x79] sm:$0xff]  ;;  %v1845_v37 = vld [vmem:[%s5698_s24 + $0x8b] sm:$0xff]  ;;  %v234_v38 = vld [vmem:[%s5698_s24 + $0x81] sm:$0xff] }
  0x1d   : > { %4804 = vmatprep.mubr.msk.f32.mxu1 %vm256_vm1, %v224_v18  ;;  %5028 = vmatprep.mubr.msk.f32.mxu0 %vm256_vm1, %v1836_v19  ;;  %v1846_v39 = vld [vmem:[%s5698_s24 + $0x93] sm:$0xff]  ;;  %v235_v40 = vld [vmem:[%s5698_s24 + $0x89] sm:$0xff]  ;;  %v1847_v41 = vld [vmem:[%s5698_s24 + $0x9b] sm:$0xff] }
  0x1e   : > { %v236_v42 = vld [vmem:[%s5698_s24 + $0x91] sm:$0xff]  ;;  %v237_v44 = vld [vmem:[%s5698_s24 + $0x99] sm:$0xff]  ;;  %v238_v46 = vld [vmem:[%s5698_s24 + $0xa1] sm:$0xff] }
  0x1f   : > { %v2260_v43 = vld [vmem:[%s5698_s24 + $0x14] sm:$0xff]  ;;  %v2261_v45 = vld [vmem:[%s5698_s24 + $0x1c] sm:$0xff]  ;;  %v5796_v47 = vld [vmem:[%s5698_s24 + $0x24] sm:$0xff] }
  0x20   : > { %4805 = vmatmul.mubr.msk.f32.gmra.mrb[6].mxu1 %vm256_vm1, %v225_v20  ;;  %5029 = vmatmul.mubr.msk.f32.gmra.mrb[6].mxu0 %vm256_vm1, %v1837_v21  ;;  %v239_v49 = vld [vmem:[%s5698_s24 + $0xa9] sm:$0xff]  ;;  %v240_v51 = vld [vmem:[%s5698_s24 + $0xb1] sm:$0xff]  ;;  %v241_v53 = vld [vmem:[%s5698_s24 + $0xb9] sm:$0xff] }
  0x21   : > { %4807 = vmatprep.mubr.msk.f32.mxu1 %vm256_vm1, %v226_v22  ;;  %5031 = vmatprep.mubr.msk.f32.mxu0 %vm256_vm1, %v1838_v23  ;;  %v5810_v50 = vld [vmem:[%s5698_s24 + $0x2c] sm:$0xff]  ;;  %v5816_v52 = vld [vmem:[%s5698_s24 + $0x34] sm:$0xff]  ;;  %v5828_v54 = vld [vmem:[%s5698_s24 + $0x3c] sm:$0xff] }
  0x22   : > { %v242_v55 = vld [vmem:[%s5698_s24 + $0xc1] sm:$0xff]  ;;  %v243_v57 = vld [vmem:[%s5698_s24 + $0xc9] sm:$0xff]  ;;  %v244_v59 = vld [vmem:[%s5698_s24 + $0xd1] sm:$0xff] }
  0x23   : > { %v5832_v56 = vld [vmem:[%s5698_s24 + $0x44] sm:$0xff]  ;;  %v5842_v58 = vld [vmem:[%s5698_s24 + $0x4c] sm:$0xff]  ;;  %v5846_v60 = vld [vmem:[%s5698_s24 + $0x54] sm:$0xff] }
  0x24   : > { %4808 = vmatmul.mubr.msk.f32.gmra.mrb[8].mxu1 %vm256_vm1, %v227_v24  ;;  %5032 = vmatmul.mubr.msk.f32.gmra.mrb[8].mxu0 %vm256_vm1, %v1839_v25  ;;  %v245_v61 = vld [vmem:[%s5698_s24 + $0xd9] sm:$0xff]  ;;  %v246_v63 = vld [vmem:[%s5698_s24 + $0xe1] sm:$0xff]  ;;  %v247_v2 = vld [vmem:[%s5698_s24 + $0xe9] sm:$0xff] }
  0x25   : > { %4810 = vmatprep.mubr.msk.f32.mxu1 %vm256_vm1, %v228_v26  ;;  %5034 = vmatprep.mubr.msk.f32.mxu0 %vm256_vm1, %v1840_v27  ;;  %v5856_v62 = vld [vmem:[%s5698_s24 + $0x5c] sm:$0xff]  ;;  %v5860_v0 = vld [vmem:[%s5698_s24 + $0x64] sm:$0xff]  ;;  %v5870_v3 = vld [vmem:[%s5698_s24 + $0x6c] sm:$0xff] }
  0x26   : > { %v248_v4 = vld [vmem:[%s5698_s24 + $0xf1] sm:$0xff]  ;;  %v249_v6 = vld [vmem:[%s5698_s24 + $0xf9] sm:$0xff]  ;;  %v250_v8 = vld [vmem:[%s5698_s24 + $0x101] sm:$0xff] }
  0x27   : > { %v5874_v5 = vld [vmem:[%s5698_s24 + $0x74] sm:$0xff]  ;;  %v5884_v7 = vld [vmem:[%s5698_s24 + $0x7c] sm:$0xff]  ;;  %v5888_v9 = vld [vmem:[%s5698_s24 + $0x84] sm:$0xff] }
  0x28   : > { %4811 = vmatmul.mubr.msk.f32.gmra.mrb[10].mxu1 %vm256_vm1, %v229_v28  ;;  %5035 = vmatmul.mubr.msk.f32.gmra.mrb[10].mxu0 %vm256_vm1, %v1841_v29  ;;  %v5898_v12 = vld [vmem:[%s5698_s24 + $0x8c] sm:$0xff]  ;;  %v5902_v14 = vld [vmem:[%s5698_s24 + $0x94] sm:$0xff]  ;;  %v5912_v16 = vld [vmem:[%s5698_s24 + $0x9c] sm:$0xff] }
  0x29   : > { %4813 = vmatprep.mubr.msk.f32.mxu1 %vm256_vm1, %v230_v30  ;;  %5037 = vmatprep.mubr.msk.f32.mxu0 %vm256_vm1, %v1842_v31  ;;  %v252_v13 = vld [vmem:[%s5698_s24 + $0x111] sm:$0xff]  ;;  %v253_v15 = vld [vmem:[%s5698_s24 + $0x119] sm:$0xff]  ;;  %v5916_v18 = vld [vmem:[%s5698_s24 + $0xa4] sm:$0xff] }
  0x2a   : > { %v181_v17 = vld [vmem:[%s5698_s24] sm:$0xff]  ;;  %v182_v19 = vld [vmem:[%s5698_s24 + $0x8] sm:$0xff]  ;;  %v183_v21 = vld [vmem:[%s5698_s24 + $0x10] sm:$0xff] }
  0x2b   : > { %v5926_v20 = vld [vmem:[%s5698_s24 + $0xac] sm:$0xff]  ;;  %v5930_v22 = vld [vmem:[%s5698_s24 + $0xb4] sm:$0xff]  ;;  %v5945_v25 = vld [vmem:[%s5698_s24 + $0xbc] sm:$0xff] }
  0x2c   : > { %4814 = vmatmul.mubr.msk.f32.gmra.mrb[12].mxu1 %vm256_vm1, %v231_v32  ;;  %5038 = vmatmul.mubr.msk.f32.gmra.mrb[12].mxu0 %vm256_vm1, %v1843_v33  ;;  %v5935_v23 = vld [vmem:[%s6655_s1 + $0xc] sm:$0xf]  ;;  %v184_v24 = vld [vmem:[%s5698_s24 + $0x18] sm:$0xff]  ;;  %v185_v26 = vld [vmem:[%s5698_s24 + $0x20] sm:$0xff] }
  0x2d   : > { %4816 = vmatprep.mubr.msk.f32.mxu1 %vm256_vm1, %v232_v34  ;;  %5040 = vmatprep.mubr.msk.f32.mxu0 %vm256_vm1, %v1844_v35  ;;  %v5951_v27 = vld [vmem:[%s5698_s24 + $0xc4] sm:$0xff]  ;;  %v5963_v28 = vld [vmem:[%s5698_s24 + $0xcc] sm:$0xff]  ;;  %v5967_v30 = vld [vmem:[%s5698_s24 + $0xd4] sm:$0xff] }
  0x2e   : > { %v187_v29 = vld [vmem:[%s5698_s24 + $0x30] sm:$0xff]  ;;  %v188_v31 = vld [vmem:[%s5698_s24 + $0x38] sm:$0xff]  ;;  %v189_v33 = vld [vmem:[%s5698_s24 + $0x40] sm:$0xff] }
  0x2f   : > { %v5977_v32 = vld [vmem:[%s5698_s24 + $0xdc] sm:$0xff]  ;;  %v5981_v34 = vld [vmem:[%s5698_s24 + $0xe4] sm:$0xff] }
  0x30   : > { %4817 = vmatmul.mubr.msk.f32.gmra.mrb[14].mxu1 %vm256_vm1, %v233_v36  ;;  %5041 = vmatmul.mubr.msk.f32.gmra.mrb[14].mxu0 %vm256_vm1, %v1845_v37  ;;  %v190_v35 = vld [vmem:[%s5698_s24 + $0x48] sm:$0xff]  ;;  %v191_v37 = vld [vmem:[%s5698_s24 + $0x50] sm:$0xff] }
  0x31   : > { %4819 = vmatprep.mubr.msk.f32.mxu1 %vm256_vm1, %v234_v38  ;;  %5043 = vmatprep.mubr.msk.f32.mxu0 %vm256_vm1, %v1846_v39  ;;  %v5991_v36 = vld [vmem:[%s5698_s24 + $0xec] sm:$0xff]  ;;  %v5995_v38 = vld [vmem:[%s5698_s24 + $0xf4] sm:$0xff] }
  0x32   : > { %v192_v39 = vld [vmem:[%s5698_s24 + $0x58] sm:$0xff] }
  0x34   : > { %4820 = vmatmul.mubr.msk.f32.gmra.mrb[16].mxu1 %vm256_vm1, %v235_v40  ;;  %5044 = vmatmul.mubr.msk.f32.gmra.mrb[16].mxu0 %vm256_vm1, %v1847_v41  ;;  %v6005_v40 = vld [vmem:[%s5698_s24 + $0xfc] sm:$0xff] }
  0x35   : > { %4822 = vmatprep.mubr.msk.f32.mxu1 %vm256_vm1, %v236_v42  ;;  %5075 = vmatprep.mubr.msk.f32.mxu0 %vm256_vm1, %v2260_v43  ;;  %v193_v41 = vld [vmem:[%s5698_s24 + $0x60] sm:$0xff]  ;;  %v194_v43 = vld [vmem:[%s5698_s24 + $0x68] sm:$0xff] }
  0x36   : > { %v6009_v42 = vld [vmem:[%s5698_s24 + $0x104] sm:$0xff] }
  0x38   : > { %4823 = vmatmul.mubr.msk.f32.gmra.mrb[18].mxu1 %vm256_vm1, %v237_v44  ;;  %5076 = vmatmul.mubr.msk.f32.vlgmr.msra.gmra.mrb[0].mxu0 %vm256_vm1, %v2261_v45  ;;  %v6019_v44 = vld [vmem:[%s5698_s24 + $0x10c] sm:$0xff] }
  0x39   : > { %5130 = vmatpush3.msk.msra.mxu0 %vm365_vm0, %v5713_v10  ;;  %4825 = vmatprep.mubr.msk.f32.mxu1 %vm256_vm1, %v238_v46  ;;  %v251_v10 = vld [vmem:[%s5698_s24 + $0x109] sm:$0xff]  ;;  %v6023_v46 = vld [vmem:[%s5698_s24 + $0x114] sm:$0xff] }
  0x3a   : > { %5078 = vmatprep.mubr.msk.f32.mxu0 %vm256_vm1, %v5796_v47  ;;  %5185 = vmatprep.subr.msk.mxu0 %vm365_vm0, %v5801_v48  ;;  %v195_v45 = vld [vmem:[%s5698_s24 + $0x70] sm:$0xff] }
  0x3c   : > { %4826 = vmatmul.mubr.msk.f32.gmra.mrb[20].mxu1 %vm256_vm1, %v239_v49  ;;  %5079 = vmatmul.mubr.msk.f32.gmra.mrb[2].mxu0 %vm256_vm1, %v5810_v50  ;;  %v196_v49 = vld [vmem:[%s5698_s24 + $0x78] sm:$0xff] }
  0x3d   : > { %4828 = vmatprep.mubr.msk.f32.mxu1 %vm256_vm1, %v240_v51  ;;  %5081 = vmatprep.mubr.msk.f32.mxu0 %vm256_vm1, %v5816_v52  ;;  %v6033_v51 = vld [vmem:[%s5698_s24 + $0x11c] sm:$0xff] }
  0x40   : > { %4829 = vmatmul.mubr.msk.f32.gmra.mrb[22].mxu1 %vm256_vm1, %v241_v53  ;;  %5082 = vmatmul.mubr.msk.f32.gmra.mrb[4].mxu0 %vm256_vm1, %v5828_v54  ;;  %v197_v53 = vld [vmem:[%s5698_s24 + $0x80] sm:$0xff] }
  0x41   : > { %4831 = vmatprep.mubr.msk.f32.mxu1 %vm256_vm1, %v242_v55  ;;  %5084 = vmatprep.mubr.msk.f32.mxu0 %vm256_vm1, %v5832_v56  ;;  %v6037_v55 = vld [vmem:[%s5698_s24 + $0x124] sm:$0xff] }
  0x44   : > { %4832 = vmatmul.mubr.msk.f32.gmra.mrb[24].mxu1 %vm256_vm1, %v243_v57  ;;  %5085 = vmatmul.mubr.msk.f32.gmra.mrb[6].mxu0 %vm256_vm1, %v5842_v58  ;;  %v198_v57 = vld [vmem:[%s5698_s24 + $0x88] sm:$0xff] }
  0x45   : > { %4834 = vmatprep.mubr.msk.f32.mxu1 %vm256_vm1, %v244_v59  ;;  %5087 = vmatprep.mubr.msk.f32.mxu0 %vm256_vm1, %v5846_v60  ;;  %v6047_v59 = vld [vmem:[%s5698_s24 + $0x12c] sm:$0xff] }
  0x48   : > { %4835 = vmatmul.mubr.msk.f32.gmra.mrb[26].mxu1 %vm256_vm1, %v245_v61  ;;  %5088 = vmatmul.mubr.msk.f32.gmra.mrb[8].mxu0 %vm256_vm1, %v5856_v62  ;;  %v199_v61 = vld [vmem:[%s5698_s24 + $0x90] sm:$0xff] }
  0x49   : > { %4837 = vmatprep.mubr.msk.f32.mxu1 %vm256_vm1, %v246_v63  ;;  %5090 = vmatprep.mubr.msk.f32.mxu0 %vm256_vm1, %v5860_v0  ;;  %v200_v63 = vld [vmem:[%s5698_s24 + $0x98] sm:$0xff] }
  0x4c   : > { %4838 = vmatmul.mubr.msk.f32.gmra.mrb[28].mxu1 %vm256_vm1, %v247_v2  ;;  %5091 = vmatmul.mubr.msk.f32.gmra.mrb[10].mxu0 %vm256_vm1, %v5870_v3  ;;  %v201_v2 = vld [vmem:[%s5698_s24 + $0xa0] sm:$0xff] }
  0x4d   : > { %4840 = vmatprep.mubr.msk.f32.mxu1 %vm256_vm1, %v248_v4  ;;  %5093 = vmatprep.mubr.msk.f32.mxu0 %vm256_vm1, %v5874_v5  ;;  %v6061_v4 = vld [vmem:[%s6655_s1 + $0x20] sm:$0xf] }
  0x50   : > { %4841 = vmatmul.mubr.msk.f32.gmra.mrb[30].mxu1 %vm256_vm1, %v249_v6  ;;  %5094 = vmatmul.mubr.msk.f32.gmra.mrb[12].mxu0 %vm256_vm1, %v5884_v7  ;;  %v203_v6 = vld [vmem:[%s5698_s24 + $0xb0] sm:$0xff] }
  0x51   : > { %4843 = vmatprep.mubr.msk.f32.mxu1 %vm256_vm1, %v250_v8  ;;  %5096 = vmatprep.mubr.msk.f32.mxu0 %vm256_vm1, %v5888_v9  ;;  %v216_v8 = vld [vmem:[%s5698_s24 + $0x118] sm:$0xff] }
  0x54   : > { %4844 = vmatmul.mubr.msk.f32.gmra.mrb[32].mxu1 %vm256_vm1, %v251_v10  ;;  %5097 = vmatmul.mubr.msk.f32.gmra.mrb[14].mxu0 %vm256_vm1, %v5898_v12  ;;  %v971_v10 = vld [vmem:[%s5698_s24 + $0xa] sm:$0xff] }
  0x55   : > { %4846 = vmatprep.mubr.msk.f32.mxu1 %vm256_vm1, %v252_v13  ;;  %5099 = vmatprep.mubr.msk.f32.mxu0 %vm256_vm1, %v5902_v14  ;;  %v6149_v13 = vld [vmem:[%s5698_s24 + $0x1a] sm:$0xff] }
  0x58   : > { %4847 = vmatmul.mubr.msk.f32.gmra.mrb[34].mxu1 %vm256_vm1, %v253_v15  ;;  %5100 = vmatmul.mubr.msk.f32.gmra.mrb[16].mxu0 %vm256_vm1, %v5912_v16  ;;  %v6167_v15 = vld [vmem:[%s5698_s24 + $0x2a] sm:$0xff] }
  0x59   : > { %4851 = vmatprep.mubr.msk.f32.mxu1 %vm256_vm1, %v181_v17  ;;  %5102 = vmatprep.mubr.msk.f32.mxu0 %vm256_vm1, %v5916_v18  ;;  %v6181_v17 = vld [vmem:[%s5698_s24 + $0x3a] sm:$0xff] }
  0x5c   : > { %4852 = vmatmul.mubr.msk.f32.vlgmr.msra.gmra.mrb[0].mxu1 %vm256_vm1, %v182_v19  ;;  %5103 = vmatmul.mubr.msk.f32.gmra.mrb[18].mxu0 %vm256_vm1, %v5926_v20  ;;  %v6195_v19 = vld [vmem:[%s5698_s24 + $0x4a] sm:$0xff] }
  0x5d   : > { %4906 = vmatpush3.msk.msra.mxu1 %vm365_vm0, %v5718_v11  ;;  %4854 = vmatprep.mubr.msk.f32.mxu1 %vm256_vm1, %v183_v21  ;;  %v186_v11 = vld [vmem:[%s5698_s24 + $0x28] sm:$0xff]  ;;  %v6209_v21 = vld [vmem:[%s5698_s24 + $0x5a] sm:$0xff] }
  0x5e   : > { %5105 = vmatprep.mubr.msk.f32.mxu0 %vm256_vm1, %v5930_v22  ;;  %4961 = vmatprep.subr.msk.mxu1 %vm365_vm0, %v5935_v23 }
  0x60   : > { %4855 = vmatmul.mubr.msk.f32.gmra.mrb[2].mxu1 %vm256_vm1, %v184_v24  ;;  %5106 = vmatmul.mubr.msk.f32.gmra.mrb[20].mxu0 %vm256_vm1, %v5945_v25  ;;  %v6226_v24 = vld [vmem:[%s5698_s24 + $0x72] sm:$0xff] }
  0x61   : > { %4857 = vmatprep.mubr.msk.f32.mxu1 %vm256_vm1, %v185_v26  ;;  %5108 = vmatprep.mubr.msk.f32.mxu0 %vm256_vm1, %v5951_v27  ;;  %v6240_v26 = vld [vmem:[%s5698_s24 + $0x82] sm:$0xff] }
  0x64   : > { %4858 = vmatmul.mubr.msk.f32.gmra.mrb[4].mxu1 %vm256_vm1, %v186_v11  ;;  %5109 = vmatmul.mubr.msk.f32.gmra.mrb[22].mxu0 %vm256_vm1, %v5963_v28  ;;  %v6251_v11 = vld [vmem:[%s5698_s24 + $0x8a] sm:$0xff] }
  0x65   : > { %4860 = vmatprep.mubr.msk.f32.mxu1 %vm256_vm1, %v187_v29  ;;  %5111 = vmatprep.mubr.msk.f32.mxu0 %vm256_vm1, %v5967_v30  ;;  %v6255_v29 = vld [vmem:[%s5698_s24 + $0x92] sm:$0xff] }
  0x68   : > { %4861 = vmatmul.mubr.msk.f32.gmra.mrb[6].mxu1 %vm256_vm1, %v188_v31  ;;  %5112 = vmatmul.mubr.msk.f32.gmra.mrb[24].mxu0 %vm256_vm1, %v5977_v32  ;;  %v6265_v31 = vld [vmem:[%s5698_s24 + $0x9a] sm:$0xff] }
  0x69   : > { %4863 = vmatprep.mubr.msk.f32.mxu1 %vm256_vm1, %v189_v33  ;;  %5114 = vmatprep.mubr.msk.f32.mxu0 %vm256_vm1, %v5981_v34  ;;  %v6269_v33 = vld [vmem:[%s5698_s24 + $0xa2] sm:$0xff] }
  0x6c   : > { %4864 = vmatmul.mubr.msk.f32.gmra.mrb[8].mxu1 %vm256_vm1, %v190_v35  ;;  %5115 = vmatmul.mubr.msk.f32.gmra.mrb[26].mxu0 %vm256_vm1, %v5991_v36  ;;  %v6280_v35 = vld [vmem:[%s5698_s24 + $0xaa] sm:$0xff] }
  0x6d   : > { %4866 = vmatprep.mubr.msk.f32.mxu1 %vm256_vm1, %v191_v37  ;;  %5117 = vmatprep.mubr.msk.f32.mxu0 %vm256_vm1, %v5995_v38  ;;  %v6285_v37 = vld [vmem:[%s5698_s24 + $0xb2] sm:$0xff] }
  0x70   : > { %4867 = vmatmul.mubr.msk.f32.gmra.mrb[10].mxu1 %vm256_vm1, %v192_v39  ;;  %5118 = vmatmul.mubr.msk.f32.gmra.mrb[28].mxu0 %vm256_vm1, %v6005_v40  ;;  %v6295_v39 = vld [vmem:[%s5698_s24 + $0xba] sm:$0xff] }
  0x71   : > { %4869 = vmatprep.mubr.msk.f32.mxu1 %vm256_vm1, %v193_v41  ;;  %5120 = vmatprep.mubr.msk.f32.mxu0 %vm256_vm1, %v6009_v42  ;;  %v6299_v41 = vld [vmem:[%s5698_s24 + $0xc2] sm:$0xff] }
  0x74   : > { %4870 = vmatmul.mubr.msk.f32.gmra.mrb[12].mxu1 %vm256_vm1, %v194_v43  ;;  %5121 = vmatmul.mubr.msk.f32.gmra.mrb[30].mxu0 %vm256_vm1, %v6019_v44  ;;  %v6309_v43 = vld [vmem:[%s5698_s24 + $0xca] sm:$0xff] }
  0x75   : > { %4872 = vmatprep.mubr.msk.f32.mxu1 %vm256_vm1, %v195_v45  ;;  %5123 = vmatprep.mubr.msk.f32.mxu0 %vm256_vm1, %v6023_v46  ;;  %v6313_v45 = vld [vmem:[%s5698_s24 + $0xd2] sm:$0xff] }
  0x78   : > { %4873 = vmatmul.mubr.msk.f32.gmra.mrb[14].mxu1 %vm256_vm1, %v196_v49  ;;  %5124 = vmatmul.mubr.msk.f32.gmra.mrb[32].mxu0 %vm256_vm1, %v6033_v51  ;;  %v6323_v49 = vld [vmem:[%s5698_s24 + $0xda] sm:$0xff] }
  0x79   : > { %4875 = vmatprep.mubr.msk.f32.mxu1 %vm256_vm1, %v197_v53  ;;  %5126 = vmatprep.mubr.msk.f32.mxu0 %vm256_vm1, %v6037_v55  ;;  %v6327_v53 = vld [vmem:[%s5698_s24 + $0xe2] sm:$0xff] }
  0x7c   : > { %4876 = vmatmul.mubr.msk.f32.gmra.mrb[16].mxu1 %vm256_vm1, %v198_v57  ;;  %5127 = vmatmul.mubr.msk.f32.gmra.mrb[34].mxu0 %vm256_vm1, %v6047_v59  ;;  %v6337_v57 = vld [vmem:[%s5698_s24 + $0xea] sm:$0xff] }
  0x7d   : > { %4878 = vmatprep.mubr.msk.f32.mxu1 %vm256_vm1, %v199_v61  ;;  %5131 = vmatprep.mubr.msk.f32.mxu0 %vm256_vm1, %v5796_v47  ;;  %v202_v47 = vld [vmem:[%s5698_s24 + $0xa8] sm:$0xff]  ;;  %v6341_v61 = vld [vmem:[%s5698_s24 + $0xf2] sm:$0xff] }
  0x80   : > { %4879 = vmatmul.mubr.msk.f32.gmra.mrb[18].mxu1 %vm256_vm1, %v200_v63  ;;  %5132 = vmatmul.mubr.msk.f32.vlgmr.msra.gmra.mrb[0].mxu0 %vm256_vm1, %v5810_v50  ;;  %v205_v50 = vld [vmem:[%s5698_s24 + $0xc0] sm:$0xff] }
  0x81   : > { %5186 = vmatpush3.msk.msra.mxu0 %vm365_vm0, %v5801_v48  ;;  %4881 = vmatprep.mubr.msk.f32.mxu1 %vm256_vm1, %v201_v2  ;;  %v204_v48 = vld [vmem:[%s5698_s24 + $0xb8] sm:$0xff]  ;;  %v3132_v63 = vld [vmem:[%s5698_s24 + $0x85] sm:$0xff] }
  0x82   : > { %5134 = vmatprep.mubr.msk.f32.mxu0 %vm256_vm1, %v5816_v52  ;;  %5241 = vmatprep.subr.msk.mxu0 %vm365_vm0, %v6061_v4  ;;  %v206_v52 = vld [vmem:[%s5698_s24 + $0xc8] sm:$0xff]  ;;  %v6351_v2 = vld [vmem:[%s5698_s24 + $0xfa] sm:$0xff] }
  0x84   : > { %4882 = vmatmul.mubr.msk.f32.gmra.mrb[20].mxu1 %vm256_vm1, %v202_v47  ;;  %5135 = vmatmul.mubr.msk.f32.gmra.mrb[2].mxu0 %vm256_vm1, %v5828_v54  ;;  %v207_v54 = vld [vmem:[%s5698_s24 + $0xd0] sm:$0xff]  ;;  %v6355_v47 = vld [vmem:[%s5698_s24 + $0x102] sm:$0xff] }
  0x85   : > { %4884 = vmatprep.mubr.msk.f32.mxu1 %vm256_vm1, %v203_v6  ;;  %5137 = vmatprep.mubr.msk.f32.mxu0 %vm256_vm1, %v5832_v56  ;;  %v208_v56 = vld [vmem:[%s5698_s24 + $0xd8] sm:$0xff] }
  0x86   : > { %v3134_v6 = vld [vmem:[%s5698_s24 + $0x95] sm:$0xff] }
  0x88   : > { %4885 = vmatmul.mubr.msk.f32.gmra.mrb[22].mxu1 %vm256_vm1, %v204_v48  ;;  %5138 = vmatmul.mubr.msk.f32.gmra.mrb[4].mxu0 %vm256_vm1, %v5842_v58  ;;  %v209_v58 = vld [vmem:[%s5698_s24 + $0xe0] sm:$0xff]  ;;  %v6365_v48 = vld [vmem:[%s5698_s24 + $0x10a] sm:$0xff] }
  0x89   : > { %4887 = vmatprep.mubr.msk.f32.mxu1 %vm256_vm1, %v205_v50  ;;  %5140 = vmatprep.mubr.msk.f32.mxu0 %vm256_vm1, %v5846_v60  ;;  %v210_v60 = vld [vmem:[%s5698_s24 + $0xe8] sm:$0xff]  ;;  %v3135_v50 = vld [vmem:[%s5698_s24 + $0x9d] sm:$0xff] }
  0x8c   : > { %4888 = vmatmul.mubr.msk.f32.gmra.mrb[24].mxu1 %vm256_vm1, %v206_v52  ;;  %5141 = vmatmul.mubr.msk.f32.gmra.mrb[6].mxu0 %vm256_vm1, %v5856_v62  ;;  %v211_v62 = vld [vmem:[%s5698_s24 + $0xf0] sm:$0xff] }
  0x8d   : > { %4890 = vmatprep.mubr.msk.f32.mxu1 %vm256_vm1, %v207_v54  ;;  %5143 = vmatprep.mubr.msk.f32.mxu0 %vm256_vm1, %v5860_v0  ;;  %v212_v0 = vld [vmem:[%s5698_s24 + $0xf8] sm:$0xff]  ;;  %v3136_v54 = vld [vmem:[%s5698_s24 + $0xa5] sm:$0xff] }
  0x8e   : > { %v6369_v52 = vld [vmem:[%s5698_s24 + $0x112] sm:$0xff] }
  0x90   : > { %4891 = vmatmul.mubr.msk.f32.gmra.mrb[26].mxu1 %vm256_vm1, %v208_v56  ;;  %5144 = vmatmul.mubr.msk.f32.gmra.mrb[8].mxu0 %vm256_vm1, %v5870_v3  ;;  %v213_v3 = vld [vmem:[%s5698_s24 + $0x100] sm:$0xff] }
  0x91   : > { %4893 = vmatprep.mubr.msk.f32.mxu1 %vm256_vm1, %v209_v58  ;;  %5146 = vmatprep.mubr.msk.f32.mxu0 %vm256_vm1, %v5874_v5  ;;  %v214_v5 = vld [vmem:[%s5698_s24 + $0x108] sm:$0xff]  ;;  %v6379_v56 = vld [vmem:[%s5698_s24 + $0x11a] sm:$0xff] }
  0x92   : > { %v3137_v58 = vld [vmem:[%s5698_s24 + $0xad] sm:$0xff] }
  0x94   : > { %4894 = vmatmul.mubr.msk.f32.gmra.mrb[28].mxu1 %vm256_vm1, %v210_v60  ;;  %5147 = vmatmul.mubr.msk.f32.gmra.mrb[10].mxu0 %vm256_vm1, %v5884_v7  ;;  %v215_v7 = vld [vmem:[%s5698_s24 + $0x110] sm:$0xff] }
  0x95   : > { %4896 = vmatprep.mubr.msk.f32.mxu1 %vm256_vm1, %v211_v62  ;;  %5149 = vmatprep.mubr.msk.f32.mxu0 %vm256_vm1, %v5888_v9  ;;  %v970_v9 = vld [vmem:[%s5698_s24 + $0x2] sm:$0xff]  ;;  %v3138_v60 = vld [vmem:[%s5698_s24 + $0xb5] sm:$0xff] }
  0x96   : > { %v3139_v62 = vld [vmem:[%s5698_s24 + $0xbd] sm:$0xff] }
  0x98   : > { %4897 = vmatmul.mubr.msk.f32.gmra.mrb[30].mxu1 %vm256_vm1, %v212_v0  ;;  %5150 = vmatmul.mubr.msk.f32.gmra.mrb[12].mxu0 %vm256_vm1, %v5898_v12  ;;  %v6139_v12 = vld [vmem:[%s5698_s24 + $0x12] sm:$0xff]  ;;  %v3140_v0 = vld [vmem:[%s5698_s24 + $0xc5] sm:$0xff] }
  0x99   : > { %4899 = vmatprep.mubr.msk.f32.mxu1 %vm256_vm1, %v213_v3  ;;  %5152 = vmatprep.mubr.msk.f32.mxu0 %vm256_vm1, %v5902_v14  ;;  %v6154_v14 = vld [vmem:[%s5698_s24 + $0x22] sm:$0xff]  ;;  %v3141_v3 = vld [vmem:[%s5698_s24 + $0xcd] sm:$0xff] }
  0x9c   : > { %4900 = vmatmul.mubr.msk.f32.gmra.mrb[32].mxu1 %vm256_vm1, %v214_v5  ;;  %5153 = vmatmul.mubr.msk.f32.gmra.mrb[14].mxu0 %vm256_vm1, %v5912_v16  ;;  %v6170_v16 = vld [vmem:[%s5698_s24 + $0x32] sm:$0xff] }
  0x9d   : > { %4902 = vmatprep.mubr.msk.f32.mxu1 %vm256_vm1, %v215_v7  ;;  %5155 = vmatprep.mubr.msk.f32.mxu0 %vm256_vm1, %v5916_v18  ;;  %v6184_v18 = vld [vmem:[%s5698_s24 + $0x42] sm:$0xff]  ;;  %v3142_v5 = vld [vmem:[%s5698_s24 + $0xd5] sm:$0xff] }
  0x9e   : > { %v3144_v7 = vld [vmem:[%s5698_s24 + $0xe5] sm:$0xff] }
  0xa0   : > { %4903 = vmatmul.mubr.msk.f32.gmra.mrb[34].mxu1 %vm256_vm1, %v216_v8  ;;  %5156 = vmatmul.mubr.msk.f32.gmra.mrb[16].mxu0 %vm256_vm1, %v5926_v20  ;;  %v6198_v20 = vld [vmem:[%s5698_s24 + $0x52] sm:$0xff] }
  0xa1   : > { %4907 = vmatprep.mubr.msk.f32.mxu1 %vm256_vm1, %v970_v9  ;;  %5158 = vmatprep.mubr.msk.f32.mxu0 %vm256_vm1, %v5930_v22  ;;  %v6212_v22 = vld [vmem:[%s5698_s24 + $0x62] sm:$0xff]  ;;  %v3145_v8 = vld [vmem:[%s5698_s24 + $0xed] sm:$0xff]  ;;  %v3146_v9 = vld [vmem:[%s5698_s24 + $0xf5] sm:$0xff] }
  0xa4   : > { %4908 = vmatmul.mubr.msk.f32.vlgmr.msra.gmra.mrb[0].mxu1 %vm256_vm1, %v971_v10  ;;  %5159 = vmatmul.mubr.msk.f32.gmra.mrb[18].mxu0 %vm256_vm1, %v5945_v25  ;;  %v6237_v25 = vld [vmem:[%s5698_s24 + $0x7a] sm:$0xff] }
  0xa5   : > { %4962 = vmatpush3.msk.msra.mxu1 %vm365_vm0, %v5935_v23  ;;  %4910 = vmatprep.mubr.msk.f32.mxu1 %vm256_vm1, %v6139_v12  ;;  %v6223_v23 = vld [vmem:[%s5698_s24 + $0x6a] sm:$0xff]  ;;  %v3147_v10 = vld [vmem:[%s5698_s24 + $0xfd] sm:$0xff] }
  0xa6   : > { %5161 = vmatprep.mubr.msk.f32.mxu0 %vm256_vm1, %v5951_v27  ;;  %5297 = vmatprep.subr.msk.mxu1 %vm365_vm0, %v5676_v1  ;;  %v2724_v27 = vld [vmem:[%s5698_s24 + $0x134] sm:$0xff] }
  0xa8   : > { %4911 = vmatmul.mubr.msk.f32.gmra.mrb[2].mxu1 %vm256_vm1, %v6149_v13  ;;  %5162 = vmatmul.mubr.msk.f32.gmra.mrb[20].mxu0 %vm256_vm1, %v5963_v28  ;;  %v2725_v28 = vld [vmem:[%s5698_s24 + $0x13c] sm:$0xff] }
  0xa9   : > { %4913 = vmatprep.mubr.msk.f32.mxu1 %vm256_vm1, %v6154_v14  ;;  %5164 = vmatprep.mubr.msk.f32.mxu0 %vm256_vm1, %v5967_v30  ;;  %v3120_v30 = vld [vmem:[%s5698_s24 + $0x25] sm:$0xff] }
  0xac   : > { %4914 = vmatmul.mubr.msk.f32.gmra.mrb[4].mxu1 %vm256_vm1, %v6167_v15  ;;  %5165 = vmatmul.mubr.msk.f32.gmra.mrb[22].mxu0 %vm256_vm1, %v5977_v32  ;;  %v3121_v32 = vld [vmem:[%s5698_s24 + $0x2d] sm:$0xff] }
  0xad   : > { %4916 = vmatprep.mubr.msk.f32.mxu1 %vm256_vm1, %v6170_v16  ;;  %5167 = vmatprep.mubr.msk.f32.mxu0 %vm256_vm1, %v5981_v34  ;;  %v3122_v34 = vld [vmem:[%s5698_s24 + $0x35] sm:$0xff] }
  0xb0   : > { %4917 = vmatmul.mubr.msk.f32.gmra.mrb[6].mxu1 %vm256_vm1, %v6181_v17  ;;  %5168 = vmatmul.mubr.msk.f32.gmra.mrb[24].mxu0 %vm256_vm1, %v5991_v36  ;;  %v3123_v36 = vld [vmem:[%s5698_s24 + $0x3d] sm:$0xff] }
  0xb1   : > { %4919 = vmatprep.mubr.msk.f32.mxu1 %vm256_vm1, %v6184_v18  ;;  %5170 = vmatprep.mubr.msk.f32.mxu0 %vm256_vm1, %v5995_v38  ;;  %v3124_v38 = vld [vmem:[%s5698_s24 + $0x45] sm:$0xff] }
  0xb4   : > { %4920 = vmatmul.mubr.msk.f32.gmra.mrb[8].mxu1 %vm256_vm1, %v6195_v19  ;;  %5171 = vmatmul.mubr.msk.f32.gmra.mrb[26].mxu0 %vm256_vm1, %v6005_v40  ;;  %v3125_v40 = vld [vmem:[%s5698_s24 + $0x4d] sm:$0xff] }
  0xb5   : > { %4922 = vmatprep.mubr.msk.f32.mxu1 %vm256_vm1, %v6198_v20  ;;  %5173 = vmatprep.mubr.msk.f32.mxu0 %vm256_vm1, %v6009_v42  ;;  %v3126_v42 = vld [vmem:[%s5698_s24 + $0x55] sm:$0xff] }
  0xb8   : > { %4923 = vmatmul.mubr.msk.f32.gmra.mrb[10].mxu1 %vm256_vm1, %v6209_v21  ;;  %5174 = vmatmul.mubr.msk.f32.gmra.mrb[28].mxu0 %vm256_vm1, %v6019_v44  ;;  %v3127_v44 = vld [vmem:[%s5698_s24 + $0x5d] sm:$0xff] }
  0xb9   : > { %4925 = vmatprep.mubr.msk.f32.mxu1 %vm256_vm1, %v6212_v22  ;;  %5176 = vmatprep.mubr.msk.f32.mxu0 %vm256_vm1, %v6023_v46  ;;  %v3128_v46 = vld [vmem:[%s5698_s24 + $0x65] sm:$0xff] }
  0xbc   : > { %4926 = vmatmul.mubr.msk.f32.gmra.mrb[12].mxu1 %vm256_vm1, %v6223_v23  ;;  %5177 = vmatmul.mubr.msk.f32.gmra.mrb[30].mxu0 %vm256_vm1, %v6033_v51  ;;  %v3129_v51 = vld [vmem:[%s5698_s24 + $0x6d] sm:$0xff] }
  0xbd   : > { %4928 = vmatprep.mubr.msk.f32.mxu1 %vm256_vm1, %v6226_v24  ;;  %5179 = vmatprep.mubr.msk.f32.mxu0 %vm256_vm1, %v6037_v55  ;;  %v3130_v55 = vld [vmem:[%s5698_s24 + $0x75] sm:$0xff] }
  0xc0   : > { %4929 = vmatmul.mubr.msk.f32.gmra.mrb[14].mxu1 %vm256_vm1, %v6237_v25  ;;  %5180 = vmatmul.mubr.msk.f32.gmra.mrb[32].mxu0 %vm256_vm1, %v6047_v59  ;;  %v3131_v59 = vld [vmem:[%s5698_s24 + $0x7d] sm:$0xff] }
  0xc1   : > { %4931 = vmatprep.mubr.msk.f32.mxu1 %vm256_vm1, %v6240_v26  ;;  %5182 = vmatprep.mubr.msk.f32.mxu0 %vm256_vm1, %v2724_v27  ;;  %v3557_v27 = vld [vmem:[%s5698_s24 + $0x5e] sm:$0xff] }
  0xc4   : > { %4932 = vmatmul.mubr.msk.f32.gmra.mrb[16].mxu1 %vm256_vm1, %v6251_v11  ;;  %5183 = vmatmul.mubr.msk.f32.gmra.mrb[34].mxu0 %vm256_vm1, %v2725_v28  ;;  %v3559_v28 = vld [vmem:[%s5698_s24 + $0x6e] sm:$0xff] }
  0xc5   : > { %4934 = vmatprep.mubr.msk.f32.mxu1 %vm256_vm1, %v6255_v29  ;;  %5187 = vmatprep.mubr.msk.f32.mxu0 %vm256_vm1, %v3120_v30  ;;  %v3561_v30 = vld [vmem:[%s5698_s24 + $0x7e] sm:$0xff] }
  0xc8   : > { %4935 = vmatmul.mubr.msk.f32.gmra.mrb[18].mxu1 %vm256_vm1, %v6265_v31  ;;  %5188 = vmatmul.mubr.msk.f32.vlgmr.msra.gmra.mrb[0].mxu0 %vm256_vm1, %v3121_v32  ;;  %v3563_v32 = vld [vmem:[%s5698_s24 + $0x8e] sm:$0xff] }
  0xc9   : > { %5242 = vmatpush3.msk.msra.mxu0 %vm365_vm0, %v6061_v4  ;;  %4937 = vmatprep.mubr.msk.f32.mxu1 %vm256_vm1, %v6269_v33  ;;  %v3133_v4 = vld [vmem:[%s5698_s24 + $0x8d] sm:$0xff] }
  0xca   : > { %5190 = vmatprep.mubr.msk.f32.mxu0 %vm256_vm1, %v3122_v34  ;;  %v3565_v34 = vld [vmem:[%s5698_s24 + $0x9e] sm:$0xff] }
  0xcc   : > { %4938 = vmatmul.mubr.msk.f32.gmra.mrb[20].mxu1 %vm256_vm1, %v6280_v35  ;;  %5191 = vmatmul.mubr.msk.f32.gmra.mrb[2].mxu0 %vm256_vm1, %v3123_v36  ;;  %v3566_v36 = vld [vmem:[%s5698_s24 + $0xa6] sm:$0xff] }
  0xcd   : > { %4940 = vmatprep.mubr.msk.f32.mxu1 %vm256_vm1, %v6285_v37  ;;  %5193 = vmatprep.mubr.msk.f32.mxu0 %vm256_vm1, %v3124_v38  ;;  %v3567_v38 = vld [vmem:[%s5698_s24 + $0xae] sm:$0xff] }
  0xd0   : > { %4941 = vmatmul.mubr.msk.f32.gmra.mrb[22].mxu1 %vm256_vm1, %v6295_v39  ;;  %5194 = vmatmul.mubr.msk.f32.gmra.mrb[4].mxu0 %vm256_vm1, %v3125_v40  ;;  %v3568_v40 = vld [vmem:[%s5698_s24 + $0xb6] sm:$0xff] }
  0xd1   : > { %4943 = vmatprep.mubr.msk.f32.mxu1 %vm256_vm1, %v6299_v41  ;;  %5196 = vmatprep.mubr.msk.f32.mxu0 %vm256_vm1, %v3126_v42  ;;  %v3569_v42 = vld [vmem:[%s5698_s24 + $0xbe] sm:$0xff] }
  0xd4   : > { %4944 = vmatmul.mubr.msk.f32.gmra.mrb[24].mxu1 %vm256_vm1, %v6309_v43  ;;  %5197 = vmatmul.mubr.msk.f32.gmra.mrb[6].mxu0 %vm256_vm1, %v3127_v44  ;;  %v3570_v44 = vld [vmem:[%s5698_s24 + $0xc6] sm:$0xff] }
  0xd5   : > { %4946 = vmatprep.mubr.msk.f32.mxu1 %vm256_vm1, %v6313_v45  ;;  %5199 = vmatprep.mubr.msk.f32.mxu0 %vm256_vm1, %v3128_v46  ;;  %v3571_v46 = vld [vmem:[%s5698_s24 + $0xce] sm:$0xff] }
  0xd8   : > { %4947 = vmatmul.mubr.msk.f32.gmra.mrb[26].mxu1 %vm256_vm1, %v6323_v49  ;;  %5200 = vmatmul.mubr.msk.f32.gmra.mrb[8].mxu0 %vm256_vm1, %v3129_v51  ;;  %v3572_v51 = vld [vmem:[%s5698_s24 + $0xd6] sm:$0xff] }
  0xd9   : > { %4949 = vmatprep.mubr.msk.f32.mxu1 %vm256_vm1, %v6327_v53  ;;  %5202 = vmatprep.mubr.msk.f32.mxu0 %vm256_vm1, %v3130_v55  ;;  %v3573_v55 = vld [vmem:[%s5698_s24 + $0xde] sm:$0xff] }
  0xdc   : > { %4950 = vmatmul.mubr.msk.f32.gmra.mrb[28].mxu1 %vm256_vm1, %v6337_v57  ;;  %5203 = vmatmul.mubr.msk.f32.gmra.mrb[10].mxu0 %vm256_vm1, %v3131_v59  ;;  %v3574_v59 = vld [vmem:[%s5698_s24 + $0xe6] sm:$0xff] }
  0xdd   : > { %4952 = vmatprep.mubr.msk.f32.mxu1 %vm256_vm1, %v6341_v61  ;;  %5205 = vmatprep.mubr.msk.f32.mxu0 %vm256_vm1, %v3132_v63  ;;  %v3575_v63 = vld [vmem:[%s5698_s24 + $0xee] sm:$0xff] }
  0xe0   : > { %4953 = vmatmul.mubr.msk.f32.gmra.mrb[30].mxu1 %vm256_vm1, %v6351_v2  ;;  %5206 = vmatmul.mubr.msk.f32.gmra.mrb[12].mxu0 %vm256_vm1, %v3133_v4  ;;  %v3576_v4 = vld [vmem:[%s5698_s24 + $0xf6] sm:$0xff] }
  0xe1   : > { %4955 = vmatprep.mubr.msk.f32.mxu1 %vm256_vm1, %v6355_v47  ;;  %5208 = vmatprep.mubr.msk.f32.mxu0 %vm256_vm1, %v3134_v6  ;;  %v3577_v6 = vld [vmem:[%s5698_s24 + $0xfe] sm:$0xff] }
  0xe4   : > { %4956 = vmatmul.mubr.msk.f32.gmra.mrb[32].mxu1 %vm256_vm1, %v6365_v48  ;;  %5209 = vmatmul.mubr.msk.f32.gmra.mrb[14].mxu0 %vm256_vm1, %v3135_v50  ;;  %v3578_v50 = vld [vmem:[%s5698_s24 + $0x106] sm:$0xff] }
  0xe5   : > { %4958 = vmatprep.mubr.msk.f32.mxu1 %vm256_vm1, %v6369_v52  ;;  %5211 = vmatprep.mubr.msk.f32.mxu0 %vm256_vm1, %v3136_v54  ;;  %v3579_v54 = vld [vmem:[%s5698_s24 + $0x10e] sm:$0xff] }
  0xe8   : > { %4959 = vmatmul.mubr.msk.f32.gmra.mrb[34].mxu1 %vm256_vm1, %v6379_v56  ;;  %5212 = vmatmul.mubr.msk.f32.gmra.mrb[16].mxu0 %vm256_vm1, %v3137_v58  ;;  %v3580_v58 = vld [vmem:[%s5698_s24 + $0x116] sm:$0xff] }
  0xe9   : > { %4963 = vmatprep.mubr.msk.f32.mxu1 %vm256_vm1, %v6139_v12  ;;  %5214 = vmatprep.mubr.msk.f32.mxu0 %vm256_vm1, %v3138_v60  ;;  %v3148_v12 = vld [vmem:[%s5698_s24 + $0x105] sm:$0xff] }
  0xea   : > { %v1861_v60 = vld [vmem:[%s5698_s24 + $0x10b] sm:$0xff] }
  0xec   : > { %4964 = vmatmul.mubr.msk.f32.vlgmr.msra.gmra.mrb[0].mxu1 %vm256_vm1, %v6149_v13  ;;  %5215 = vmatmul.mubr.msk.f32.gmra.mrb[18].mxu0 %vm256_vm1, %v3139_v62  ;;  %v3149_v13 = vld [vmem:[%s5698_s24 + $0x10d] sm:$0xff]  ;;  %v3581_v62 = vld [vmem:[%s5698_s24 + $0x11e] sm:$0xff] }
  0xed   : > { %5298 = vmatpush3.msk.msra.mxu1 %vm365_vm0, %v5676_v1  ;;  %4966 = vmatprep.mubr.msk.f32.mxu1 %vm256_vm1, %v6154_v14  ;;  %v3143_v1 = vld [vmem:[%s5698_s24 + $0xdd] sm:$0xff]  ;;  %v3150_v14 = vld [vmem:[%s5698_s24 + $0x115] sm:$0xff] }
  0xee   : > { %5217 = vmatprep.mubr.msk.f32.mxu0 %vm256_vm1, %v3140_v0  ;;  %v1862_v0 = vld [vmem:[%s5698_s24 + $0x113] sm:$0xff] }
  0xf0   : > { %4967 = vmatmul.mubr.msk.f32.gmra.mrb[2].mxu1 %vm256_vm1, %v6167_v15  ;;  %5218 = vmatmul.mubr.msk.f32.gmra.mrb[20].mxu0 %vm256_vm1, %v3141_v3  ;;  %v3151_v15 = vld [vmem:[%s5698_s24 + $0x11d] sm:$0xff]  ;;  %v3582_v3 = vld [vmem:[%s5698_s24 + $0x126] sm:$0xff] }
  0xf1   : > { %4969 = vmatprep.mubr.msk.f32.mxu1 %vm256_vm1, %v6170_v16  ;;  %5220 = vmatprep.mubr.msk.f32.mxu0 %vm256_vm1, %v3142_v5  ;;  %v3152_v16 = vld [vmem:[%s5698_s24 + $0x125] sm:$0xff]  ;;  %v1863_v5 = vld [vmem:[%s5698_s24 + $0x11b] sm:$0xff] }
  0xf4   : > { %4970 = vmatmul.mubr.msk.f32.gmra.mrb[4].mxu1 %vm256_vm1, %v6181_v17  ;;  %5221 = vmatmul.mubr.msk.f32.gmra.mrb[22].mxu0 %vm256_vm1, %v3143_v1  ;;  %v3153_v17 = vld [vmem:[%s5698_s24 + $0x12d] sm:$0xff] }
  0xf5   : > { %4972 = vmatprep.mubr.msk.f32.mxu1 %vm256_vm1, %v6184_v18  ;;  %5223 = vmatprep.mubr.msk.f32.mxu0 %vm256_vm1, %v3144_v7  ;;  %v3154_v18 = vld [vmem:[%s5698_s24 + $0x135] sm:$0xff]  ;;  %v1864_v7 = vld [vmem:[%s5698_s24 + $0x123] sm:$0xff] }
  0xf6   : > { %v3583_v1 = vld [vmem:[%s5698_s24 + $0x12e] sm:$0xff] }
  0xf8   : > { %4973 = vmatmul.mubr.msk.f32.gmra.mrb[6].mxu1 %vm256_vm1, %v6195_v19  ;;  %5224 = vmatmul.mubr.msk.f32.gmra.mrb[24].mxu0 %vm256_vm1, %v3145_v8  ;;  %v3155_v19 = vld [vmem:[%s5698_s24 + $0x13d] sm:$0xff] }
  0xf9   : > { %4975 = vmatprep.mubr.msk.f32.mxu1 %vm256_vm1, %v6198_v20  ;;  %5226 = vmatprep.mubr.msk.f32.mxu0 %vm256_vm1, %v3146_v9  ;;  %v3550_v20 = vld [vmem:[%s5698_s24 + $0x26] sm:$0xff]  ;;  %v3584_v8 = vld [vmem:[%s5698_s24 + $0x136] sm:$0xff] }
  0xfa   : > { %v1865_v9 = vld [vmem:[%s5698_s24 + $0x12b] sm:$0xff] }
  0xfc   : > { %4976 = vmatmul.mubr.msk.f32.gmra.mrb[8].mxu1 %vm256_vm1, %v6209_v21  ;;  %5227 = vmatmul.mubr.msk.f32.gmra.mrb[26].mxu0 %vm256_vm1, %v3147_v10  ;;  %v3551_v21 = vld [vmem:[%s5698_s24 + $0x2e] sm:$0xff]  ;;  %v3585_v10 = vld [vmem:[%s5698_s24 + $0x13e] sm:$0xff] }
  0xfd   : > { %4978 = vmatprep.mubr.msk.f32.mxu1 %vm256_vm1, %v6212_v22  ;;  %5229 = vmatprep.mubr.msk.f32.mxu0 %vm256_vm1, %v3148_v12  ;;  %v3552_v22 = vld [vmem:[%s5698_s24 + $0x36] sm:$0xff] }
 0x100   : > { %4979 = vmatmul.mubr.msk.f32.gmra.mrb[10].mxu1 %vm256_vm1, %v6223_v23  ;;  %5230 = vmatmul.mubr.msk.f32.gmra.mrb[28].mxu0 %vm256_vm1, %v3149_v13  ;;  %v3553_v23 = vld [vmem:[%s5698_s24 + $0x3e] sm:$0xff] }
 0x101   : > { %4981 = vmatprep.mubr.msk.f32.mxu1 %vm256_vm1, %v6226_v24  ;;  %5232 = vmatprep.mubr.msk.f32.mxu0 %vm256_vm1, %v3150_v14  ;;  %v3554_v24 = vld [vmem:[%s5698_s24 + $0x46] sm:$0xff] }
 0x104   : > { %4982 = vmatmul.mubr.msk.f32.gmra.mrb[12].mxu1 %vm256_vm1, %v6237_v25  ;;  %5233 = vmatmul.mubr.msk.f32.gmra.mrb[30].mxu0 %vm256_vm1, %v3151_v15  ;;  %v3555_v25 = vld [vmem:[%s5698_s24 + $0x4e] sm:$0xff] }
 0x105   : > { %4984 = vmatprep.mubr.msk.f32.mxu1 %vm256_vm1, %v6240_v26  ;;  %5235 = vmatprep.mubr.msk.f32.mxu0 %vm256_vm1, %v3152_v16  ;;  %v3556_v26 = vld [vmem:[%s5698_s24 + $0x56] sm:$0xff] }
 0x108   : > { %4985 = vmatmul.mubr.msk.f32.gmra.mrb[14].mxu1 %vm256_vm1, %v6251_v11  ;;  %5236 = vmatmul.mubr.msk.f32.gmra.mrb[32].mxu0 %vm256_vm1, %v3153_v17  ;;  %v3558_v11 = vld [vmem:[%s5698_s24 + $0x66] sm:$0xff] }
 0x109   : > { %4987 = vmatprep.mubr.msk.f32.mxu1 %vm256_vm1, %v6255_v29  ;;  %5238 = vmatprep.mubr.msk.f32.mxu0 %vm256_vm1, %v3154_v18  ;;  %v3560_v29 = vld [vmem:[%s5698_s24 + $0x76] sm:$0xff] }
 0x10c   : > { %4988 = vmatmul.mubr.msk.f32.gmra.mrb[16].mxu1 %vm256_vm1, %v6265_v31  ;;  %5239 = vmatmul.mubr.msk.f32.gmra.mrb[34].mxu0 %vm256_vm1, %v3155_v19  ;;  %v3562_v31 = vld [vmem:[%s5698_s24 + $0x86] sm:$0xff] }
 0x10d   : > { %4990 = vmatprep.mubr.msk.f32.mxu1 %vm256_vm1, %v6269_v33  ;;  %5243 = vmatprep.mubr.msk.f32.mxu0 %vm256_vm1, %v3550_v20  ;;  %v3564_v33 = vld [vmem:[%s5698_s24 + $0x96] sm:$0xff] }
 0x110   : > { %4991 = vmatmul.mubr.msk.f32.gmra.mrb[18].mxu1 %vm256_vm1, %v6280_v35  ;;  %5244 = vmatmul.mubr.msk.f32.vlgmr.msra.gmra.mrb[0].mxu0 %vm256_vm1, %v3551_v21  ;;  %v1434_v35 = vld [vmem:[%s5698_s24 + $0x122] sm:$0xff] }
 0x111   : > { %4993 = vmatprep.mubr.msk.f32.mxu1 %vm256_vm1, %v6285_v37  ;;  %5246 = vmatprep.mubr.msk.f32.mxu0 %vm256_vm1, %v3552_v22  ;;  %v1435_v37 = vld [vmem:[%s5698_s24 + $0x12a] sm:$0xff] }
 0x114   : > { %4994 = vmatmul.mubr.msk.f32.gmra.mrb[20].mxu1 %vm256_vm1, %v6295_v39  ;;  %5247 = vmatmul.mubr.msk.f32.gmra.mrb[2].mxu0 %vm256_vm1, %v3553_v23  ;;  %v1848_v39 = vld [vmem:[%s5698_s24 + $0xa3] sm:$0xff] }
 0x115   : > { %4996 = vmatprep.mubr.msk.f32.mxu1 %vm256_vm1, %v6299_v41  ;;  %5249 = vmatprep.mubr.msk.f32.mxu0 %vm256_vm1, %v3554_v24  ;;  %v1849_v41 = vld [vmem:[%s5698_s24 + $0xab] sm:$0xff] }
 0x118   : > { %4997 = vmatmul.mubr.msk.f32.gmra.mrb[22].mxu1 %vm256_vm1, %v6309_v43  ;;  %5250 = vmatmul.mubr.msk.f32.gmra.mrb[4].mxu0 %vm256_vm1, %v3555_v25  ;;  %v1850_v43 = vld [vmem:[%s5698_s24 + $0xb3] sm:$0xff] }
 0x119   : > { %4999 = vmatprep.mubr.msk.f32.mxu1 %vm256_vm1, %v6313_v45  ;;  %5252 = vmatprep.mubr.msk.f32.mxu0 %vm256_vm1, %v3556_v26  ;;  %v1851_v45 = vld [vmem:[%s5698_s24 + $0xbb] sm:$0xff] }
 0x11c   : > { %5000 = vmatmul.mubr.msk.f32.gmra.mrb[24].mxu1 %vm256_vm1, %v6323_v49  ;;  %5253 = vmatmul.mubr.msk.f32.gmra.mrb[6].mxu0 %vm256_vm1, %v3557_v27  ;;  %v1852_v49 = vld [vmem:[%s5698_s24 + $0xc3] sm:$0xff] }
 0x11d   : > { %5002 = vmatprep.mubr.msk.f32.mxu1 %vm256_vm1, %v6327_v53  ;;  %5255 = vmatprep.mubr.msk.f32.mxu0 %vm256_vm1, %v3558_v11  ;;  %v1853_v53 = vld [vmem:[%s5698_s24 + $0xcb] sm:$0xff] }
 0x120   : > { %5003 = vmatmul.mubr.msk.f32.gmra.mrb[26].mxu1 %vm256_vm1, %v6337_v57  ;;  %5256 = vmatmul.mubr.msk.f32.gmra.mrb[8].mxu0 %vm256_vm1, %v3559_v28  ;;  %v1854_v57 = vld [vmem:[%s5698_s24 + $0xd3] sm:$0xff] }
 0x121   : > { %5005 = vmatprep.mubr.msk.f32.mxu1 %vm256_vm1, %v6341_v61  ;;  %5258 = vmatprep.mubr.msk.f32.mxu0 %vm256_vm1, %v3560_v29  ;;  %v1855_v61 = vld [vmem:[%s5698_s24 + $0xdb] sm:$0xff] }
 0x124   : > { %5006 = vmatmul.mubr.msk.f32.gmra.mrb[28].mxu1 %vm256_vm1, %v6351_v2  ;;  %5259 = vmatmul.mubr.msk.f32.gmra.mrb[10].mxu0 %vm256_vm1, %v3561_v30  ;;  %v1856_v2 = vld [vmem:[%s5698_s24 + $0xe3] sm:$0xff] }
 0x125   : > { %5008 = vmatprep.mubr.msk.f32.mxu1 %vm256_vm1, %v6355_v47  ;;  %5261 = vmatprep.mubr.msk.f32.mxu0 %vm256_vm1, %v3562_v31  ;;  %v1857_v47 = vld [vmem:[%s5698_s24 + $0xeb] sm:$0xff] }
 0x128   : > { %5009 = vmatmul.mubr.msk.f32.gmra.mrb[30].mxu1 %vm256_vm1, %v6365_v48  ;;  %5262 = vmatmul.mubr.msk.f32.gmra.mrb[12].mxu0 %vm256_vm1, %v3563_v32  ;;  %v1858_v48 = vld [vmem:[%s5698_s24 + $0xf3] sm:$0xff] }
 0x129   : > { %5011 = vmatprep.mubr.msk.f32.mxu1 %vm256_vm1, %v6369_v52  ;;  %5264 = vmatprep.mubr.msk.f32.mxu0 %vm256_vm1, %v3564_v33  ;;  %v1859_v52 = vld [vmem:[%s5698_s24 + $0xfb] sm:$0xff] }
 0x12c   : > { %5012 = vmatmul.mubr.msk.f32.gmra.mrb[32].mxu1 %vm256_vm1, %v6379_v56  ;;  %5265 = vmatmul.mubr.msk.f32.gmra.mrb[14].mxu0 %vm256_vm1, %v3565_v34  ;;  %v1860_v56 = vld [vmem:[%s5698_s24 + $0x103] sm:$0xff] }
 0x12d   : > { %5014 = vmatprep.mubr.msk.f32.mxu1 %vm256_vm1, %v1434_v35  ;;  %5267 = vmatprep.mubr.msk.f32.mxu0 %vm256_vm1, %v3566_v36 }
 0x130   : > { %5015 = vmatmul.mubr.msk.f32.gmra.mrb[34].mxu1 %vm256_vm1, %v1435_v37  ;;  %5268 = vmatmul.mubr.msk.f32.gmra.mrb[16].mxu0 %vm256_vm1, %v3567_v38 }
 0x131   : > { %5046 = vmatprep.mubr.msk.f32.mxu1 %vm256_vm1, %v1848_v39  ;;  %5270 = vmatprep.mubr.msk.f32.mxu0 %vm256_vm1, %v3568_v40 }
 0x134   : > { %5047 = vmatmul.mubr.msk.f32.vlgmr.msra.gmra.mrb[18].mxu1 %vm256_vm1, %v1849_v41  ;;  %5271 = vmatmul.mubr.msk.f32.gmra.mrb[18].mxu0 %vm256_vm1, %v3569_v42 }
 0x135   : > { %5049 = vmatprep.mubr.msk.f32.mxu1 %vm256_vm1, %v1850_v43  ;;  %5273 = vmatprep.mubr.msk.f32.mxu0 %vm256_vm1, %v3570_v44 }
 0x138   : > { %5050 = vmatmul.mubr.msk.f32.gmra.mrb[20].mxu1 %vm256_vm1, %v1851_v45  ;;  %5274 = vmatmul.mubr.msk.f32.gmra.mrb[20].mxu0 %vm256_vm1, %v3571_v46 }
 0x139   : > { %5052 = vmatprep.mubr.msk.f32.mxu1 %vm256_vm1, %v1852_v49  ;;  %5276 = vmatprep.mubr.msk.f32.mxu0 %vm256_vm1, %v3572_v51 }
 0x13c   : > { %5053 = vmatmul.mubr.msk.f32.gmra.mrb[22].mxu1 %vm256_vm1, %v1853_v53  ;;  %5277 = vmatmul.mubr.msk.f32.gmra.mrb[22].mxu0 %vm256_vm1, %v3573_v55 }
 0x13d   : > { %5055 = vmatprep.mubr.msk.f32.mxu1 %vm256_vm1, %v1854_v57  ;;  %5279 = vmatprep.mubr.msk.f32.mxu0 %vm256_vm1, %v3574_v59 }
 0x140   : > { %5056 = vmatmul.mubr.msk.f32.gmra.mrb[24].mxu1 %vm256_vm1, %v1855_v61  ;;  %5280 = vmatmul.mubr.msk.f32.gmra.mrb[24].mxu0 %vm256_vm1, %v3575_v63 }
 0x141   : > { %5058 = vmatprep.mubr.msk.f32.mxu1 %vm256_vm1, %v1856_v2  ;;  %5282 = vmatprep.mubr.msk.f32.mxu0 %vm256_vm1, %v3576_v4 }
 0x144   : > { %5059 = vmatmul.mubr.msk.f32.gmra.mrb[26].mxu1 %vm256_vm1, %v1857_v47  ;;  %5283 = vmatmul.mubr.msk.f32.gmra.mrb[26].mxu0 %vm256_vm1, %v3577_v6 }
 0x145   : > { %5061 = vmatprep.mubr.msk.f32.mxu1 %vm256_vm1, %v1858_v48  ;;  %5285 = vmatprep.mubr.msk.f32.mxu0 %vm256_vm1, %v3578_v50 }
 0x148   : > { %5062 = vmatmul.mubr.msk.f32.gmra.mrb[28].mxu1 %vm256_vm1, %v1859_v52  ;;  %5286 = vmatmul.mubr.msk.f32.gmra.mrb[28].mxu0 %vm256_vm1, %v3579_v54 }
 0x149   : > { %5064 = vmatprep.mubr.msk.f32.mxu1 %vm256_vm1, %v1860_v56  ;;  %5288 = vmatprep.mubr.msk.f32.mxu0 %vm256_vm1, %v3580_v58 }
 0x14c   : > { %5065 = vmatmul.mubr.msk.f32.gmra.mrb[30].mxu1 %vm256_vm1, %v1861_v60  ;;  %5289 = vmatmul.mubr.msk.f32.gmra.mrb[30].mxu0 %vm256_vm1, %v3581_v62 }
 0x14d   : > { %5067 = vmatprep.mubr.msk.f32.mxu1 %vm256_vm1, %v1862_v0  ;;  %5291 = vmatprep.mubr.msk.f32.mxu0 %vm256_vm1, %v3582_v3 }
 0x150   : > { %5068 = vmatmul.mubr.msk.f32.gmra.mrb[32].mxu1 %vm256_vm1, %v1863_v5  ;;  %5292 = vmatmul.mubr.msk.f32.gmra.mrb[32].mxu0 %vm256_vm1, %v3583_v1 }
 0x151   : > { %5070 = vmatprep.mubr.msk.f32.mxu1 %vm256_vm1, %v1864_v7  ;;  %5294 = vmatprep.mubr.msk.f32.mxu0 %vm256_vm1, %v3584_v8 }
 0x154   : > { %5071 = vmatmul.mubr.msk.f32.gmra.mrb[34].mxu1 %vm256_vm1, %v1865_v9  ;;  %5295 = vmatmul.mubr.msk.f32.gmra.mrb[34].mxu0 %vm256_vm1, %v3585_v10 }
 0x1bf   : > { %v4965_v12 = vpop.f32.mrb[0].mxu1 }
 0x1c0   : > { %v1615_v13 = vpop.f32.mrb[1].mxu1 }
 0x1c3   : > { %v4968_v14 = vpop.f32.mrb[2].mxu1 }
 0x1c4   : > { %v1625_v15 = vpop.f32.mrb[3].mxu1 }
 0x1c7   : > { %v4971_v16 = vpop.f32.mrb[4].mxu1 }
 0x1c8   : > { %v1635_v17 = vpop.f32.mrb[5].mxu1 }
 0x1cb   : > { %v4974_v18 = vpop.f32.mrb[6].mxu1 }
 0x1cc   : > { %v1645_v19 = vpop.f32.mrb[7].mxu1 }
 0x1cf   : > { %v4977_v20 = vpop.f32.mrb[8].mxu1 }
 0x1d0   : > { %v1655_v21 = vpop.f32.mrb[9].mxu1 }
 0x1d3   : > { %v4980_v22 = vpop.f32.mrb[10].mxu1 }
 0x1d4   : > { %v1665_v23 = vpop.f32.mrb[11].mxu1 }
 0x1d7   : > { %v4983_v24 = vpop.f32.mrb[12].mxu1 }
 0x1d8   : > { %v1675_v25 = vpop.f32.mrb[13].mxu1 }
 0x1db   : > { %v4986_v26 = vpop.f32.mrb[14].mxu1 }
 0x1dc   : > { %v1685_v27 = vpop.f32.mrb[15].mxu1 }
 0x1df   : > { %v4989_v11 = vpop.f32.mrb[16].mxu1 }
 0x1e0   : > { %v1695_v28 = vpop.f32.mrb[17].mxu1 }
 0x1e3   : > { %v5245_v29 = vpop.f32.mrb[0].mxu0 }
 0x1e4   : > { %v5299_v30 = vadd.f32 %v5245_v29, %v4965_v12  ;;  %v3765_v31 = vpop.f32.mrb[1].mxu0 }
 0x1e5   : > { %v5300_v32 = vadd.f32 %v3765_v31, %v1615_v13 }
 0x1e6   : > { %3981 = vst [vmem:[%s6607_s14 + $0x8] sm:$0xff] %v5299_v30 }
 0x1e7   : > { %3980 = vst [vmem:[%s6607_s14] sm:$0xff] %v5300_v32  ;;  %v5248_v33 = vpop.f32.mrb[2].mxu0 }
 0x1e8   : > { %v5301_v34 = vadd.f32 %v5248_v33, %v4968_v14  ;;  %v3775_v35 = vpop.f32.mrb[3].mxu0 }
 0x1e9   : > { %v5302_v36 = vadd.f32 %v3775_v35, %v1625_v15 }
 0x1ea   : > { %3983 = vst [vmem:[%s6607_s14 + $0x18] sm:$0xff] %v5301_v34 }
 0x1eb   : > { %3982 = vst [vmem:[%s6607_s14 + $0x10] sm:$0xff] %v5302_v36  ;;  %v5251_v37 = vpop.f32.mrb[4].mxu0 }
 0x1ec   : > { %v5303_v38 = vadd.f32 %v5251_v37, %v4971_v16  ;;  %v3785_v39 = vpop.f32.mrb[5].mxu0 }
 0x1ed   : > { %v5304_v40 = vadd.f32 %v3785_v39, %v1635_v17 }
 0x1ee   : > { %3985 = vst [vmem:[%s6607_s14 + $0x28] sm:$0xff] %v5303_v38 }
 0x1ef   : > { %3984 = vst [vmem:[%s6607_s14 + $0x20] sm:$0xff] %v5304_v40  ;;  %v5254_v41 = vpop.f32.mrb[6].mxu0 }
 0x1f0   : > { %v5305_v42 = vadd.f32 %v5254_v41, %v4974_v18  ;;  %v3795_v43 = vpop.f32.mrb[7].mxu0 }
 0x1f1   : > { %v5306_v44 = vadd.f32 %v3795_v43, %v1645_v19 }
 0x1f2   : > { %3987 = vst [vmem:[%s6607_s14 + $0x38] sm:$0xff] %v5305_v42 }
 0x1f3   : > { %3986 = vst [vmem:[%s6607_s14 + $0x30] sm:$0xff] %v5306_v44  ;;  %v5257_v45 = vpop.f32.mrb[8].mxu0 }
 0x1f4   : > { %v5307_v46 = vadd.f32 %v5257_v45, %v4977_v20  ;;  %v3805_v49 = vpop.f32.mrb[9].mxu0 }
 0x1f5   : > { %v5308_v51 = vadd.f32 %v3805_v49, %v1655_v21 }
 0x1f6   : > { %3989 = vst [vmem:[%s6607_s14 + $0x48] sm:$0xff] %v5307_v46 }
 0x1f7   : > { %3988 = vst [vmem:[%s6607_s14 + $0x40] sm:$0xff] %v5308_v51  ;;  %v5260_v53 = vpop.f32.mrb[10].mxu0 }
 0x1f8   : > { %v5309_v55 = vadd.f32 %v5260_v53, %v4980_v22  ;;  %v3815_v57 = vpop.f32.mrb[11].mxu0 }
 0x1f9   : > { %v5310_v59 = vadd.f32 %v3815_v57, %v1665_v23 }
 0x1fa   : > { %3991 = vst [vmem:[%s6607_s14 + $0x58] sm:$0xff] %v5309_v55 }
 0x1fb   : > { %3990 = vst [vmem:[%s6607_s14 + $0x50] sm:$0xff] %v5310_v59  ;;  %v5263_v61 = vpop.f32.mrb[12].mxu0 }
 0x1fc   : > { %v5311_v63 = vadd.f32 %v5263_v61, %v4983_v24  ;;  %v3825_v2 = vpop.f32.mrb[13].mxu0 }
 0x1fd   : > { %v5312_v4 = vadd.f32 %v3825_v2, %v1675_v25 }
 0x1fe   : > { %3993 = vst [vmem:[%s6607_s14 + $0x68] sm:$0xff] %v5311_v63 }
 0x1ff   : > { %3992 = vst [vmem:[%s6607_s14 + $0x60] sm:$0xff] %v5312_v4  ;;  %v5266_v47 = vpop.f32.mrb[14].mxu0 }
 0x200   : > { %v5313_v6 = vadd.f32 %v5266_v47, %v4986_v26  ;;  %v3835_v48 = vpop.f32.mrb[15].mxu0 }
 0x201   : > { %v5314_v50 = vadd.f32 %v3835_v48, %v1685_v27 }
 0x202   : > { %3995 = vst [vmem:[%s6607_s14 + $0x78] sm:$0xff] %v5313_v6 }
 0x203   : > { %3994 = vst [vmem:[%s6607_s14 + $0x70] sm:$0xff] %v5314_v50  ;;  %v5269_v52 = vpop.f32.mrb[16].mxu0 }
 0x204   : > { %v5315_v54 = vadd.f32 %v5269_v52, %v4989_v11  ;;  %v3845_v56 = vpop.f32.mrb[17].mxu0 }
 0x205   : > { %v5316_v58 = vadd.f32 %v3845_v56, %v1695_v28 }
 0x206   : > { %3997 = vst [vmem:[%s6607_s14 + $0x88] sm:$0xff] %v5315_v54 }
 0x207   : > { %3996 = vst [vmem:[%s6607_s14 + $0x80] sm:$0xff] %v5316_v58  ;;  %v5048_v60 = vpop.f32.mrb[18].mxu1  ;;  %v5272_v62 = vpop.f32.mrb[18].mxu0 }
 0x208   : > { %v5317_v0 = vadd.f32 %v5272_v62, %v5048_v60  ;;  %v2135_v3 = vpop.f32.mrb[19].mxu1  ;;  %v3855_v5 = vpop.f32.mrb[19].mxu0 }
 0x209   : > { %v5318_v1 = vadd.f32 %v3855_v5, %v2135_v3 }
 0x20a   : > { %3999 = vst [vmem:[%s6607_s14 + $0x98] sm:$0xff] %v5317_v0 }
 0x20b   : > { %3998 = vst [vmem:[%s6607_s14 + $0x90] sm:$0xff] %v5318_v1  ;;  %v5051_v7 = vpop.f32.mrb[20].mxu1  ;;  %v5275_v8 = vpop.f32.mrb[20].mxu0 }
 0x20c   : > { %v5319_v9 = vadd.f32 %v5275_v8, %v5051_v7  ;;  %v2145_v10 = vpop.f32.mrb[21].mxu1  ;;  %v3865_v12 = vpop.f32.mrb[21].mxu0 }
 0x20d   : > { %v5320_v13 = vadd.f32 %v3865_v12, %v2145_v10 }
 0x20e   : > { %4001 = vst [vmem:[%s6607_s14 + $0xa8] sm:$0xff] %v5319_v9 }
 0x20f   : > { %4000 = vst [vmem:[%s6607_s14 + $0xa0] sm:$0xff] %v5320_v13  ;;  %v5054_v14 = vpop.f32.mrb[22].mxu1  ;;  %v5278_v15 = vpop.f32.mrb[22].mxu0 }
 0x210   : > { %v5321_v16 = vadd.f32 %v5278_v15, %v5054_v14  ;;  %v2155_v17 = vpop.f32.mrb[23].mxu1  ;;  %v3875_v18 = vpop.f32.mrb[23].mxu0 }
 0x211   : > { %v5322_v19 = vadd.f32 %v3875_v18, %v2155_v17 }
 0x212   : > { %4003 = vst [vmem:[%s6607_s14 + $0xb8] sm:$0xff] %v5321_v16 }
 0x213   : > { %4002 = vst [vmem:[%s6607_s14 + $0xb0] sm:$0xff] %v5322_v19  ;;  %v5057_v20 = vpop.f32.mrb[24].mxu1  ;;  %v5281_v21 = vpop.f32.mrb[24].mxu0 }
 0x214   : > { %v5323_v22 = vadd.f32 %v5281_v21, %v5057_v20  ;;  %v2165_v23 = vpop.f32.mrb[25].mxu1  ;;  %v3885_v24 = vpop.f32.mrb[25].mxu0 }
 0x215   : > { %v5324_v25 = vadd.f32 %v3885_v24, %v2165_v23 }
 0x216   : > { %4005 = vst [vmem:[%s6607_s14 + $0xc8] sm:$0xff] %v5323_v22 }
 0x217   : > { %4004 = vst [vmem:[%s6607_s14 + $0xc0] sm:$0xff] %v5324_v25  ;;  %v5060_v26 = vpop.f32.mrb[26].mxu1  ;;  %v5284_v27 = vpop.f32.mrb[26].mxu0 }
 0x218   : > { %v5325_v11 = vadd.f32 %v5284_v27, %v5060_v26  ;;  %v2175_v28 = vpop.f32.mrb[27].mxu1  ;;  %v3895_v29 = vpop.f32.mrb[27].mxu0 }
 0x219   : > { %v5326_v30 = vadd.f32 %v3895_v29, %v2175_v28 }
 0x21a   : > { %4007 = vst [vmem:[%s6607_s14 + $0xd8] sm:$0xff] %v5325_v11 }
 0x21b   : > { %4006 = vst [vmem:[%s6607_s14 + $0xd0] sm:$0xff] %v5326_v30  ;;  %v5063_v31 = vpop.f32.mrb[28].mxu1  ;;  %v5287_v32 = vpop.f32.mrb[28].mxu0 }
 0x21c   : > { %v5327_v33 = vadd.f32 %v5287_v32, %v5063_v31  ;;  %v2185_v34 = vpop.f32.mrb[29].mxu1  ;;  %v3905_v35 = vpop.f32.mrb[29].mxu0 }
 0x21d   : > { %v5328_v36 = vadd.f32 %v3905_v35, %v2185_v34 }
 0x21e   : > { %4009 = vst [vmem:[%s6607_s14 + $0xe8] sm:$0xff] %v5327_v33 }
 0x21f   : > { %4008 = vst [vmem:[%s6607_s14 + $0xe0] sm:$0xff] %v5328_v36  ;;  %v5066_v37 = vpop.f32.mrb[30].mxu1  ;;  %v5290_v38 = vpop.f32.mrb[30].mxu0 }
 0x220   : > { %v5329_v39 = vadd.f32 %v5290_v38, %v5066_v37  ;;  %v2195_v40 = vpop.f32.mrb[31].mxu1  ;;  %v3915_v41 = vpop.f32.mrb[31].mxu0 }
 0x221   : > { %v5330_v42 = vadd.f32 %v3915_v41, %v2195_v40 }
 0x222   : > { %4011 = vst [vmem:[%s6607_s14 + $0xf8] sm:$0xff] %v5329_v39 }
 0x223   : > { %4010 = vst [vmem:[%s6607_s14 + $0xf0] sm:$0xff] %v5330_v42  ;;  %v5069_v43 = vpop.f32.mrb[32].mxu1  ;;  %v5293_v44 = vpop.f32.mrb[32].mxu0 }
 0x224   : > { %v5331_v45 = vadd.f32 %v5293_v44, %v5069_v43  ;;  %v2205_v46 = vpop.f32.mrb[33].mxu1  ;;  %v3925_v49 = vpop.f32.mrb[33].mxu0 }
 0x225   : > { %v5332_v51 = vadd.f32 %v3925_v49, %v2205_v46 }
 0x226   : > { %4013 = vst [vmem:[%s6607_s14 + $0x108] sm:$0xff] %v5331_v45 }
 0x227   : > { %4012 = vst [vmem:[%s6607_s14 + $0x100] sm:$0xff] %v5332_v51  ;;  %v5072_v53 = vpop.f32.mrb[34].mxu1  ;;  %v5296_v55 = vpop.f32.mrb[34].mxu0 }
 0x228   : > { %v5333_v57 = vadd.f32 %v5296_v55, %v5072_v53  ;;  %v2215_v59 = vpop.f32.mrb[35].mxu1  ;;  %v3935_v61 = vpop.f32.mrb[35].mxu0 }
 0x229   : > { %v5334_v63 = vadd.f32 %v3935_v61, %v2215_v59 }
 0x22a   : > { %4015 = vst [vmem:[%s6607_s14 + $0x118] sm:$0xff] %v5333_v57 }
 0x22b   : > { %4014 = vst [vmem:[%s6607_s14 + $0x110] sm:$0xff] %v5334_v63 }
 0x22c PF: > { %s12_s11 = sadd.s32 1, %s5635_s11   ;;  %s6657_s9 = smov %s5631_s10 }
 0x22d   : > { %p9_p5 = scmp.ge.s32.totalorder %s12_s11, 4   ;;  %s6658_s10 = smov %s6660_s12 }
 0x22f   :  { %11 = sbr.rel (!%p9_p5) target bundleno = 2 (0x2), region = 69 }

</bundles_post_ra>
